<compile_context>
chip_gen: v7x
topology: tpu7x:2x2x1
jax: 0.10.0
libtpu: 0.0.40
codegen_flags: <defaults>
</compile_context>

<pallas_src>
import math

import jax
import jax.numpy as jnp
from jax import lax
from jax.experimental import pallas as pl
from jax.experimental.pallas import tpu as pltpu


# ---------------------------------------------------------------------------
# nearest-neighbour 2x upsample (H and W), channels-last  (use_conv=False)
# ---------------------------------------------------------------------------
def _upsample2x_kernel(x_ref, o_ref):
    """x_ref: (rb, W, C) -> o_ref: (rb, 2, W, 2*C).

    o[r, dh, w, dw*C + c] = x[r, w, c]; the wrapper's free row-major reshape
    turns this into nearest-neighbour 2x upsampling.
    """
    x = x_ref[...]                                   # (rb, W, C)
    wide = jnp.concatenate([x, x], axis=-1)          # (rb, W, 2C): dw copies
    o_ref[:, 0, :, :] = wide                         # dh = 0
    o_ref[:, 1, :, :] = wide                         # dh = 1


def _upsample2x_nhwc_rows(x_rows, *, in_block_bytes=1 << 20):
    """x_rows: (R, W, C) -> (R, 2, W, 2*C) nearest-neighbour duplication."""
    R, W, C = x_rows.shape
    itemsize = x_rows.dtype.itemsize
    # ~1 MiB of input per block; with the 4x output and double buffering the
    # per-step footprint is ~10x that.  Multiple of 8, no divisor constraint:
    # the cdiv grid masks the partial last block.
    rb = max(1, in_block_bytes // max(W * C * itemsize, 1))
    rb = max(8, (rb // 8) * 8)
    rb = min(rb, R)
    return pl.pallas_call(
        _upsample2x_kernel,
        out_shape=jax.ShapeDtypeStruct((R, 2, W, 2 * C), x_rows.dtype),
        grid=(pl.cdiv(R, rb),),
        in_specs=[pl.BlockSpec((rb, W, C), lambda i: (i, 0, 0))],
        out_specs=pl.BlockSpec((rb, 2, W, 2 * C), lambda i: (i, 0, 0, 0)),
        compiler_params=pltpu.CompilerParams(
            dimension_semantics=("parallel",)),
    )(x_rows)


# ---------------------------------------------------------------------------
# fused nearest-2x upsample + 3x3 "same" conv, channels-last (use_conv=True)
# ---------------------------------------------------------------------------
# Row-tap index sets: which original 3x3 taps kh fall on row offset rh for
# output row parity dh (identical structure for columns / dw, rw).
_TAPS = {(0, 0): (0,), (0, 1): (1, 2), (1, 0): (0, 1), (1, 1): (2,)}


def _effective_weights(w_oihw, dtype):
    """(Cout, Cin, 3, 3) -> (2, 2, 2, 2*Cin, Cout) phase weights.

    weff[dh, dw, rh, rw*Cin + ci, co] = sum_{kh in TAPS[dh,rh], kw in TAPS[dw,rw]}
                                        w[co, ci, kh, kw]
    """
    w = jnp.transpose(w_oihw, (2, 3, 1, 0))          # (3, 3, Cin, Cout)
    per_dh = []
    for dh in (0, 1):
        per_dw = []
        for dw in (0, 1):
            per_rh = []
            for rh in (0, 1):
                per_rw = []
                for rw in (0, 1):
                    acc = jnp.zeros(w.shape[2:], w.dtype)       # (Cin, Cout)
                    for kh in _TAPS[(dh, rh)]:
                        for kw in _TAPS[(dw, rw)]:
                            acc = acc + w[kh, kw]
                    per_rw.append(acc)
                per_rh.append(jnp.concatenate(per_rw, axis=0))  # (2Cin, Cout)
            per_dw.append(jnp.stack(per_rh, axis=0))            # (2, 2Cin, Cout)
        per_dh.append(jnp.stack(per_dw, axis=0))                # (2, 2, 2Cin, Cout)
    return jnp.stack(per_dh, axis=0).astype(dtype)              # (2,2,2,2Cin,Cout)


def _up_conv_kernel(xm_ref, xt_ref, w_ref, b_ref, o_ref):
    """One row tile of fused nearest-2x upsample + 3x3 conv (padding=1).

    xm_ref: (1, rb, W+2, Cin)   padded-input rows [t*rb, t*rb+rb)
    xt_ref: (1, 2,  W+2, Cin)   2-row halo tail   [t*rb+rb, t*rb+rb+2)
    w_ref:  (2, 2, 2, 2*Cin, Cout)  effective phase weights (rw folded into K)
    b_ref:  (1, Cout) float32
    o_ref:  (1, rb, 2, W, 2*Cout) with o[0,i,dh,j,dw*Cout+c] = y[2i+dh,2j+dw,c]
    """
    rb, wp, cin = xm_ref.shape[1], xm_ref.shape[2], xm_ref.shape[3]
    w_out = wp - 2
    cout = b_ref.shape[1]

    # (rb+2, W+2, Cin): tile rows + halo; concat along the outer axis is cheap.
    x = jnp.concatenate([xm_ref[0], xt_ref[0]], axis=0)

    # Column-parity operands with both column taps folded onto the lane axis:
    #   p[dw][r, j, rw*Cin + ci] = x[r, j + dw + rw, ci]        (rb+2, W, 2Cin)
    p = [jnp.concatenate([x[:, dw:dw + w_out, :],
                          x[:, dw + 1:dw + 1 + w_out, :]], axis=-1)
         for dw in (0, 1)]

    bias = b_ref[...]                                            # (1, Cout) f32
    for dh in (0, 1):
        halves = []
        for dw in (0, 1):
            # Row taps are outer-dim slices (layout preserving); the reshape
            # merges (rb, W) into the MXU M dimension.
            op0 = p[dw][dh:dh + rb].reshape(rb * w_out, 2 * cin)
            op1 = p[dw][dh + 1:dh + 1 + rb].reshape(rb * w_out, 2 * cin)
            acc = jnp.dot(op0, w_ref[dh, dw, 0],
                          preferred_element_type=jnp.float32)
            acc = acc + jnp.dot(op1, w_ref[dh, dw, 1],
                                preferred_element_type=jnp.float32)
            halves.append((acc + bias).reshape(rb, w_out, cout))
        # lane concat -> dense (rb, W, 2*Cout) store per output row parity.
        o_ref[0, :, dh, :, :] = jnp.concatenate(halves, axis=-1).astype(o_ref.dtype)


def _upsample2x_conv3x3_nhwc(x_nhwc, w_oihw, bias):
    """x_nhwc: (B, H, W, Cin) -> (B, 2H, 2W, Cout), fused up+pad+conv."""
    B, H, W, Cin = x_nhwc.shape
    Cout = w_oihw.shape[0]
    itemsize = x_nhwc.dtype.itemsize
    Wp = W + 2

    # Row tile: even, sized so in/out blocks + folded operands + f32
    # temporaries (double buffered) stay well under the default scoped VMEM.
    per_row = (6 * Wp * Cin * itemsize                # x rows + x_all + p[0]/p[1]
               + 4 * W * Cout * (itemsize + 8))       # out rows + ~2 f32 temps
    w_bytes = 8 * Cin * Cout * itemsize
    budget = max(1 << 20, (10 << 20) - 2 * w_bytes)
    rb = max(2, min(256, budget // max(per_row, 1)))
    rb = (rb // 2) * 2                                # even (halo-tail indexing)
    rb = min(rb, H + (H & 1))                         # at most one tile of rows
    h_pad = -(-H // rb) * rb                          # ceil to multiple of rb
    n_row_tiles = h_pad // rb
    half_rb = rb // 2

    # Pad at ORIGINAL resolution: 1-pixel conv halo (+ extra zero rows so the
    # row grid divides evenly; those output rows are sliced off below).
    xp = jnp.pad(x_nhwc, ((0, 0), (1, 1 + (h_pad - H)), (1, 1), (0, 0)))

    weff = _effective_weights(w_oihw, x_nhwc.dtype)   # (2, 2, 2, 2Cin, Cout)
    b32 = bias.reshape(1, Cout).astype(jnp.float32)   # bias stays f32

    flops = 32 * B * h_pad * W * Cin * Cout
    bytes_accessed = ((xp.size + weff.size) * itemsize + b32.size * 4
                      + B * h_pad * 4 * W * Cout * itemsize)

    out5 = pl.pallas_call(
        _up_conv_kernel,
        out_shape=jax.ShapeDtypeStruct((B, h_pad, 2, W, 2 * Cout), x_nhwc.dtype),
        grid=(B, n_row_tiles),
        in_specs=[
            # main rows of the padded input
            pl.BlockSpec((1, rb, Wp, Cin), lambda b, t: (b, t, 0, 0)),
            # 2-row halo tail (same array, second spec); rb even => exact
            pl.BlockSpec((1, 2, Wp, Cin),
                         lambda b, t: (b, (t + 1) * half_rb, 0, 0)),
            # constant effective weights
            # TODO(synk): pipeline_mode=pl.Buffered(1) here (constant block)
            #             to save VMEM on v7x for wide layers.
            pl.BlockSpec((2, 2, 2, 2 * Cin, Cout),
                         lambda b, t: (0, 0, 0, 0, 0)),
            pl.BlockSpec((1, Cout), lambda b, t: (0, 0)),
        ],
        out_specs=pl.BlockSpec((1, rb, 2, W, 2 * Cout),
                               lambda b, t: (b, t, 0, 0, 0)),
        compiler_params=pltpu.CompilerParams(
            dimension_semantics=("parallel", "parallel")),
        cost_estimate=pl.CostEstimate(flops=int(flops), transcendentals=0,
                                      bytes_accessed=int(bytes_accessed)),
    )(xp, xp, weff, b32)

    # (B, h_pad, 2, W, 2*Cout) --slice--> (B, H, 2, W, 2*Cout) --free reshape-->
    # (B, 2H, 2W, Cout)   (row-major order b, h, dh, w, dw, c is preserved).
    return out5[:, :H].reshape(B, 2 * H, 2 * W, Cout)


# ---------------------------------------------------------------------------
# Upsample.forward equivalent (NCHW in / NCHW out)
# ---------------------------------------------------------------------------
def upsample_forward(x, *, channels, use_conv, dims=2, conv_w=None, conv_b=None):
    assert x.shape[1] == channels
    if dims == 2:
        B, C, H, W = x.shape
        xt = jnp.transpose(x, (0, 2, 3, 1))                       # NCHW -> NHWC
        if use_conv:
            assert conv_w is not None and conv_b is not None
            y = _upsample2x_conv3x3_nhwc(xt, conv_w, conv_b)      # fused kernel
        else:
            up = _upsample2x_nhwc_rows(xt.reshape(B * H, W, C))   # (B*H,2,W,2C)
            y = up.reshape(B, 2 * H, 2 * W, C)                    # free reshape
        return jnp.transpose(y, (0, 3, 1, 2))                     # back to NCHW
    elif dims == 3:
        B, C, D, H, W = x.shape
        xt = jnp.transpose(x, (0, 2, 3, 4, 1))                    # (B, D, H, W, C)
        up = _upsample2x_nhwc_rows(xt.reshape(B * D * H, W, C))
        y = up.reshape(B, D, 2 * H, 2 * W, C)
        if use_conv:
            # TODO(synk): conv_nd(dims=3) (Conv3d) is not ported to Pallas.
            raise NotImplementedError("use_conv with dims=3 is not implemented")
        return jnp.transpose(y, (0, 4, 1, 2, 3))
    else:
        # TODO(synk): dims==1 (Conv1d path) not ported; openaimodel uses dims==2.
        raise NotImplementedError("dims must be 2 or 3")


def init_upsample_params(key, channels, out_channels=None, use_conv=True,
                         dtype=jnp.float32):
    """Deterministic params mimicking nn.Conv2d default init."""
    out_channels = out_channels or channels
    if not use_conv:
        return {}
    kw, kb = jax.random.split(key)
    bound = 1.0 / math.sqrt(channels * 3 * 3)
    w = jax.random.uniform(kw, (out_channels, channels, 3, 3), dtype, -bound, bound)
    b = jax.random.uniform(kb, (out_channels,), dtype, -bound, bound)
    return {"w": w, "b": b}


if __name__ == "__main__":
    key = jax.random.PRNGKey(0)

    def conv_reference(x, w, b):
        up = jnp.repeat(jnp.repeat(x, 2, axis=2), 2, axis=3)
        y = lax.conv_general_dilated(
            up, w, window_strides=(1, 1), padding=((1, 1), (1, 1)),
            dimension_numbers=("NCHW", "OIHW", "NCHW"),
            precision=lax.Precision.HIGHEST)
        return y + b.reshape(1, -1, 1, 1)

    # --- main config ---------------------------------------------------------
    B, C, H, W = 2, 64, 16, 16
    kx, kp = jax.random.split(key)
    x = jax.random.normal(kx, (B, C, H, W), dtype=jnp.float32)
    params = init_upsample_params(kp, C, use_conv=True)

    y = upsample_forward(x, channels=C, use_conv=True, dims=2,
                         conv_w=params["w"], conv_b=params["b"])
    y = jax.block_until_ready(y)
    y_plain = upsample_forward(x, channels=C, use_conv=False, dims=2)
    y_plain = jax.block_until_ready(y_plain)

    up_ref = jnp.repeat(jnp.repeat(x, 2, axis=2), 2, axis=3)
    conv_ref = conv_reference(x, params["w"], params["b"])
    assert y_plain.shape == (B, C, 2 * H, 2 * W)
    assert y.shape == (B, C, 2 * H, 2 * W)
    # Upsample kernel is pure data movement -> essentially exact.
    assert jnp.allclose(y_plain, up_ref, atol=1e-6, rtol=1e-6), "upsample mismatch"
    # Fused conv: MXU f32 matmuls with pre-summed phase weights; tolerance
    # leaves headroom for accumulation-order differences vs. the XLA reference.
    assert jnp.allclose(y, conv_ref, atol=2e-3, rtol=2e-3), "upsample+conv mismatch"

    # --- odd sizes: exercises row padding / non-pow2 spatial dims -------------
    B2, C2, H2, W2 = 1, 64, 9, 12
    kx2, kp2 = jax.random.split(kp)
    x2 = jax.random.normal(kx2, (B2, C2, H2, W2), dtype=jnp.float32)
    params2 = init_upsample_params(kp2, C2, use_conv=True)
    y2 = jax.block_until_ready(
        upsample_forward(x2, channels=C2, use_conv=True, dims=2,
                         conv_w=params2["w"], conv_b=params2["b"]))
    y2_plain = jax.block_until_ready(
        upsample_forward(x2, channels=C2, use_conv=False, dims=2))
    assert jnp.allclose(y2_plain, jnp.repeat(jnp.repeat(x2, 2, axis=2), 2, axis=3),
                        atol=1e-6, rtol=1e-6), "odd-size upsample mismatch"
    assert jnp.allclose(y2, conv_reference(x2, params2["w"], params2["b"]),
                        atol=2e-3, rtol=2e-3), "odd-size upsample+conv mismatch"

    # --- dims==3: nearest upsample of the inner two dims only -----------------
    x3 = jax.random.normal(kx, (1, 32, 3, 8, 8), dtype=jnp.float32)
    y3 = jax.block_until_ready(
        upsample_forward(x3, channels=32, use_conv=False, dims=3))
    ref3 = jnp.repeat(jnp.repeat(x3, 2, axis=3), 2, axis=4)
    assert y3.shape == (1, 32, 3, 16, 16)
    assert jnp.allclose(y3, ref3, atol=1e-6, rtol=1e-6), "dims=3 upsample mismatch"

    print("KERNEL_OK")
</pallas_src>

<mosaic_0001>
module attributes {stable_mosaic.version = 11 : i64} {
  func.func @_up_conv_kernel(%arg0: i32, %arg1: i32, %arg2: memref<1x16x18x64xf32, #tpu.memory_space<vmem>>, %arg3: memref<1x2x18x64xf32, #tpu.memory_space<vmem>>, %arg4: memref<2x2x2x128x64xf32, #tpu.memory_space<vmem>>, %arg5: memref<1x64xf32, #tpu.memory_space<vmem>>, %arg6: memref<1x16x2x16x128xf32, #tpu.memory_space<vmem>>) attributes {dimension_semantics = [#tpu.dimension_semantics<parallel>, #tpu.dimension_semantics<parallel>], iteration_bounds = array<i64: 2, 1>, scalar_prefetch = 0 : i64, scratch_operands = 0 : i64, tpu.core_type = #tpu.core_type<tc>, window_params = [{transform_indices = @transform_0, window_bounds = array<i64: 1, 16, 18, 64>}, {transform_indices = @transform_1, window_bounds = array<i64: 1, 2, 18, 64>}, {pipeline_mode = #tpu.pipeline_mode<synchronous>, transform_indices = @transform_2, window_bounds = array<i64: 2, 2, 2, 128, 64>}, {pipeline_mode = #tpu.pipeline_mode<synchronous>, transform_indices = @transform_3, window_bounds = array<i64: 1, 64>}, {transform_indices = @transform_4, window_bounds = array<i64: 1, 16, 2, 16, 128>}]} {
    %c0 = arith.constant 0 : index
    %c0_0 = arith.constant 0 : index
    %c0_1 = arith.constant 0 : index
    %c0_2 = arith.constant 0 : index
    %0 = vector.load %arg2[%c0, %c0_0, %c0_1, %c0_2] : memref<1x16x18x64xf32, #tpu.memory_space<vmem>>, vector<1x16x18x64xf32>
    %1 = vector.shape_cast %0 : vector<1x16x18x64xf32> to vector<16x18x64xf32>
    %c0_3 = arith.constant 0 : index
    %c0_4 = arith.constant 0 : index
    %c0_5 = arith.constant 0 : index
    %c0_6 = arith.constant 0 : index
    %2 = vector.load %arg3[%c0_3, %c0_4, %c0_5, %c0_6] : memref<1x2x18x64xf32, #tpu.memory_space<vmem>>, vector<1x2x18x64xf32>
    %3 = vector.shape_cast %2 : vector<1x2x18x64xf32> to vector<2x18x64xf32>
    %4 = tpu.concatenate %1, %3 in 0 : vector<16x18x64xf32>, vector<2x18x64xf32> -> vector<18x18x64xf32>
    %5 = vector.extract_strided_slice %4 {offsets = [0, 0, 0], sizes = [18, 16, 64], strides = [1, 1, 1]} : vector<18x18x64xf32> to vector<18x16x64xf32>
    %6 = vector.extract_strided_slice %4 {offsets = [0, 1, 0], sizes = [18, 16, 64], strides = [1, 1, 1]} : vector<18x18x64xf32> to vector<18x16x64xf32>
    %7 = tpu.concatenate %5, %6 in 2 : vector<18x16x64xf32>, vector<18x16x64xf32> -> vector<18x16x128xf32>
    %8 = vector.extract_strided_slice %4 {offsets = [0, 1, 0], sizes = [18, 16, 64], strides = [1, 1, 1]} : vector<18x18x64xf32> to vector<18x16x64xf32>
    %9 = vector.extract_strided_slice %4 {offsets = [0, 2, 0], sizes = [18, 16, 64], strides = [1, 1, 1]} : vector<18x18x64xf32> to vector<18x16x64xf32>
    %10 = tpu.concatenate %8, %9 in 2 : vector<18x16x64xf32>, vector<18x16x64xf32> -> vector<18x16x128xf32>
    %c0_7 = arith.constant 0 : index
    %c0_8 = arith.constant 0 : index
    %11 = vector.load %arg5[%c0_7, %c0_8] : memref<1x64xf32, #tpu.memory_space<vmem>>, vector<1x64xf32>
    %12 = vector.extract_strided_slice %7 {offsets = [0, 0, 0], sizes = [16, 16, 128], strides = [1, 1, 1]} : vector<18x16x128xf32> to vector<16x16x128xf32>
    %13 = vector.shape_cast %12 : vector<16x16x128xf32> to vector<256x128xf32>
    %14 = vector.extract_strided_slice %7 {offsets = [1, 0, 0], sizes = [16, 16, 128], strides = [1, 1, 1]} : vector<18x16x128xf32> to vector<16x16x128xf32>
    %15 = vector.shape_cast %14 : vector<16x16x128xf32> to vector<256x128xf32>
    %c0_9 = arith.constant 0 : index
    %c0_10 = arith.constant 0 : index
    %c0_11 = arith.constant 0 : index
    %c0_12 = arith.constant 0 : index
    %c0_13 = arith.constant 0 : index
    %16 = vector.load %arg4[%c0_9, %c0_10, %c0_11, %c0_12, %c0_13] : memref<2x2x2x128x64xf32, #tpu.memory_space<vmem>>, vector<1x1x1x128x64xf32>
    %17 = vector.shape_cast %16 : vector<1x1x1x128x64xf32> to vector<128x64xf32>
    %cst = arith.constant dense<0.000000e+00> : vector<256x64xf32>
    %18 = tpu.matmul %13, %17, %cst {dimension_numbers = #tpu.dot_dimension_numbers<[1], [0], [0], [1], [0, 0, 1, 1], [], []>} : vector<256x128xf32>, vector<128x64xf32>, vector<256x64xf32> -> vector<256x64xf32>
    %c0_14 = arith.constant 0 : index
    %c0_15 = arith.constant 0 : index
    %c1 = arith.constant 1 : index
    %c0_16 = arith.constant 0 : index
    %c0_17 = arith.constant 0 : index
    %19 = vector.load %arg4[%c0_14, %c0_15, %c1, %c0_16, %c0_17] : memref<2x2x2x128x64xf32, #tpu.memory_space<vmem>>, vector<1x1x1x128x64xf32>
    %20 = vector.shape_cast %19 : vector<1x1x1x128x64xf32> to vector<128x64xf32>
    %cst_18 = arith.constant dense<0.000000e+00> : vector<256x64xf32>
    %21 = tpu.matmul %15, %20, %cst_18 {dimension_numbers = #tpu.dot_dimension_numbers<[1], [0], [0], [1], [0, 0, 1, 1], [], []>} : vector<256x128xf32>, vector<128x64xf32>, vector<256x64xf32> -> vector<256x64xf32>
    %22 = arith.addf %18, %21 : vector<256x64xf32>
    %23 = vector.broadcast %11 : vector<1x64xf32> to vector<256x64xf32>
    %24 = arith.addf %22, %23 : vector<256x64xf32>
    %25 = vector.shape_cast %24 : vector<256x64xf32> to vector<16x16x64xf32>
    %26 = vector.extract_strided_slice %10 {offsets = [0, 0, 0], sizes = [16, 16, 128], strides = [1, 1, 1]} : vector<18x16x128xf32> to vector<16x16x128xf32>
    %27 = vector.shape_cast %26 : vector<16x16x128xf32> to vector<256x128xf32>
    %28 = vector.extract_strided_slice %10 {offsets = [1, 0, 0], sizes = [16, 16, 128], strides = [1, 1, 1]} : vector<18x16x128xf32> to vector<16x16x128xf32>
    %29 = vector.shape_cast %28 : vector<16x16x128xf32> to vector<256x128xf32>
    %c0_19 = arith.constant 0 : index
    %c1_20 = arith.constant 1 : index
    %c0_21 = arith.constant 0 : index
    %c0_22 = arith.constant 0 : index
    %c0_23 = arith.constant 0 : index
    %30 = vector.load %arg4[%c0_19, %c1_20, %c0_21, %c0_22, %c0_23] : memref<2x2x2x128x64xf32, #tpu.memory_space<vmem>>, vector<1x1x1x128x64xf32>
    %31 = vector.shape_cast %30 : vector<1x1x1x128x64xf32> to vector<128x64xf32>
    %cst_24 = arith.constant dense<0.000000e+00> : vector<256x64xf32>
    %32 = tpu.matmul %27, %31, %cst_24 {dimension_numbers = #tpu.dot_dimension_numbers<[1], [0], [0], [1], [0, 0, 1, 1], [], []>} : vector<256x128xf32>, vector<128x64xf32>, vector<256x64xf32> -> vector<256x64xf32>
    %c0_25 = arith.constant 0 : index
    %c1_26 = arith.constant 1 : index
    %c1_27 = arith.constant 1 : index
    %c0_28 = arith.constant 0 : index
    %c0_29 = arith.constant 0 : index
    %33 = vector.load %arg4[%c0_25, %c1_26, %c1_27, %c0_28, %c0_29] : memref<2x2x2x128x64xf32, #tpu.memory_space<vmem>>, vector<1x1x1x128x64xf32>
    %34 = vector.shape_cast %33 : vector<1x1x1x128x64xf32> to vector<128x64xf32>
    %cst_30 = arith.constant dense<0.000000e+00> : vector<256x64xf32>
    %35 = tpu.matmul %29, %34, %cst_30 {dimension_numbers = #tpu.dot_dimension_numbers<[1], [0], [0], [1], [0, 0, 1, 1], [], []>} : vector<256x128xf32>, vector<128x64xf32>, vector<256x64xf32> -> vector<256x64xf32>
    %36 = arith.addf %32, %35 : vector<256x64xf32>
    %37 = vector.broadcast %11 : vector<1x64xf32> to vector<256x64xf32>
    %38 = arith.addf %36, %37 : vector<256x64xf32>
    %39 = vector.shape_cast %38 : vector<256x64xf32> to vector<16x16x64xf32>
    %40 = tpu.concatenate %25, %39 in 2 : vector<16x16x64xf32>, vector<16x16x64xf32> -> vector<16x16x128xf32>
    %c0_31 = arith.constant 0 : index
    %c0_32 = arith.constant 0 : index
    %c0_33 = arith.constant 0 : index
    %c0_34 = arith.constant 0 : index
    %c0_35 = arith.constant 0 : index
    %41 = vector.load %arg6[%c0_31, %c0_32, %c0_33, %c0_34, %c0_35] : memref<1x16x2x16x128xf32, #tpu.memory_space<vmem>>, vector<1x16x1x16x128xf32>
    %42 = vector.shape_cast %41 : vector<1x16x1x16x128xf32> to vector<16x16x128xf32>
    %43 = vector.shape_cast %40 : vector<16x16x128xf32> to vector<1x16x1x16x128xf32>
    tpu.vector_store %arg6[%c0_31, %c0_32, %c0_33, %c0_34, %c0_35], %43 {strides = array<i32>} : memref<1x16x2x16x128xf32, #tpu.memory_space<vmem>>, vector<1x16x1x16x128xf32>,
    %44 = vector.extract_strided_slice %7 {offsets = [1, 0, 0], sizes = [16, 16, 128], strides = [1, 1, 1]} : vector<18x16x128xf32> to vector<16x16x128xf32>
    %45 = vector.shape_cast %44 : vector<16x16x128xf32> to vector<256x128xf32>
    %46 = vector.extract_strided_slice %7 {offsets = [2, 0, 0], sizes = [16, 16, 128], strides = [1, 1, 1]} : vector<18x16x128xf32> to vector<16x16x128xf32>
    %47 = vector.shape_cast %46 : vector<16x16x128xf32> to vector<256x128xf32>
    %c1_36 = arith.constant 1 : index
    %c0_37 = arith.constant 0 : index
    %c0_38 = arith.constant 0 : index
    %c0_39 = arith.constant 0 : index
    %c0_40 = arith.constant 0 : index
    %48 = vector.load %arg4[%c1_36, %c0_37, %c0_38, %c0_39, %c0_40] : memref<2x2x2x128x64xf32, #tpu.memory_space<vmem>>, vector<1x1x1x128x64xf32>
    %49 = vector.shape_cast %48 : vector<1x1x1x128x64xf32> to vector<128x64xf32>
    %cst_41 = arith.constant dense<0.000000e+00> : vector<256x64xf32>
    %50 = tpu.matmul %45, %49, %cst_41 {dimension_numbers = #tpu.dot_dimension_numbers<[1], [0], [0], [1], [0, 0, 1, 1], [], []>} : vector<256x128xf32>, vector<128x64xf32>, vector<256x64xf32> -> vector<256x64xf32>
    %c1_42 = arith.constant 1 : index
    %c0_43 = arith.constant 0 : index
    %c1_44 = arith.constant 1 : index
    %c0_45 = arith.constant 0 : index
    %c0_46 = arith.constant 0 : index
    %51 = vector.load %arg4[%c1_42, %c0_43, %c1_44, %c0_45, %c0_46] : memref<2x2x2x128x64xf32, #tpu.memory_space<vmem>>, vector<1x1x1x128x64xf32>
    %52 = vector.shape_cast %51 : vector<1x1x1x128x64xf32> to vector<128x64xf32>
    %cst_47 = arith.constant dense<0.000000e+00> : vector<256x64xf32>
    %53 = tpu.matmul %47, %52, %cst_47 {dimension_numbers = #tpu.dot_dimension_numbers<[1], [0], [0], [1], [0, 0, 1, 1], [], []>} : vector<256x128xf32>, vector<128x64xf32>, vector<256x64xf32> -> vector<256x64xf32>
    %54 = arith.addf %50, %53 : vector<256x64xf32>
    %55 = vector.broadcast %11 : vector<1x64xf32> to vector<256x64xf32>
    %56 = arith.addf %54, %55 : vector<256x64xf32>
    %57 = vector.shape_cast %56 : vector<256x64xf32> to vector<16x16x64xf32>
    %58 = vector.extract_strided_slice %10 {offsets = [1, 0, 0], sizes = [16, 16, 128], strides = [1, 1, 1]} : vector<18x16x128xf32> to vector<16x16x128xf32>
    %59 = vector.shape_cast %58 : vector<16x16x128xf32> to vector<256x128xf32>
    %60 = vector.extract_strided_slice %10 {offsets = [2, 0, 0], sizes = [16, 16, 128], strides = [1, 1, 1]} : vector<18x16x128xf32> to vector<16x16x128xf32>
    %61 = vector.shape_cast %60 : vector<16x16x128xf32> to vector<256x128xf32>
    %c1_48 = arith.constant 1 : index
    %c1_49 = arith.constant 1 : index
    %c0_50 = arith.constant 0 : index
    %c0_51 = arith.constant 0 : index
    %c0_52 = arith.constant 0 : index
    %62 = vector.load %arg4[%c1_48, %c1_49, %c0_50, %c0_51, %c0_52] : memref<2x2x2x128x64xf32, #tpu.memory_space<vmem>>, vector<1x1x1x128x64xf32>
    %63 = vector.shape_cast %62 : vector<1x1x1x128x64xf32> to vector<128x64xf32>
    %cst_53 = arith.constant dense<0.000000e+00> : vector<256x64xf32>
    %64 = tpu.matmul %59, %63, %cst_53 {dimension_numbers = #tpu.dot_dimension_numbers<[1], [0], [0], [1], [0, 0, 1, 1], [], []>} : vector<256x128xf32>, vector<128x64xf32>, vector<256x64xf32> -> vector<256x64xf32>
    %c1_54 = arith.constant 1 : index
    %c1_55 = arith.constant 1 : index
    %c1_56 = arith.constant 1 : index
    %c0_57 = arith.constant 0 : index
    %c0_58 = arith.constant 0 : index
    %65 = vector.load %arg4[%c1_54, %c1_55, %c1_56, %c0_57, %c0_58] : memref<2x2x2x128x64xf32, #tpu.memory_space<vmem>>, vector<1x1x1x128x64xf32>
    %66 = vector.shape_cast %65 : vector<1x1x1x128x64xf32> to vector<128x64xf32>
    %cst_59 = arith.constant dense<0.000000e+00> : vector<256x64xf32>
    %67 = tpu.matmul %61, %66, %cst_59 {dimension_numbers = #tpu.dot_dimension_numbers<[1], [0], [0], [1], [0, 0, 1, 1], [], []>} : vector<256x128xf32>, vector<128x64xf32>, vector<256x64xf32> -> vector<256x64xf32>
    %68 = arith.addf %64, %67 : vector<256x64xf32>
    %69 = vector.broadcast %11 : vector<1x64xf32> to vector<256x64xf32>
    %70 = arith.addf %68, %69 : vector<256x64xf32>
    %71 = vector.shape_cast %70 : vector<256x64xf32> to vector<16x16x64xf32>
    %72 = tpu.concatenate %57, %71 in 2 : vector<16x16x64xf32>, vector<16x16x64xf32> -> vector<16x16x128xf32>
    %c0_60 = arith.constant 0 : index
    %c0_61 = arith.constant 0 : index
    %c1_62 = arith.constant 1 : index
    %c0_63 = arith.constant 0 : index
    %c0_64 = arith.constant 0 : index
    %73 = vector.load %arg6[%c0_60, %c0_61, %c1_62, %c0_63, %c0_64] : memref<1x16x2x16x128xf32, #tpu.memory_space<vmem>>, vector<1x16x1x16x128xf32>
    %74 = vector.shape_cast %73 : vector<1x16x1x16x128xf32> to vector<16x16x128xf32>
    %75 = vector.shape_cast %72 : vector<16x16x128xf32> to vector<1x16x1x16x128xf32>
    tpu.vector_store %arg6[%c0_60, %c0_61, %c1_62, %c0_63, %c0_64], %75 {strides = array<i32>} : memref<1x16x2x16x128xf32, #tpu.memory_space<vmem>>, vector<1x16x1x16x128xf32>,
    return
  }
  func.func @transform_0(%arg0: i32, %arg1: i32) -> (i32, i32, i32, i32) {
    %c0_i32 = arith.constant 0 : i32
    %c0_i32_0 = arith.constant 0 : i32
    %c0_i32_1 = arith.constant 0 : i32
    return %arg0, %arg1, %c0_i32, %c0_i32_0 : i32, i32, i32, i32
  }
  func.func @transform_1(%arg0: i32, %arg1: i32) -> (i32, i32, i32, i32) {
    %c1_i32 = arith.constant 1 : i32
    %0 = arith.addi %arg1, %c1_i32 : i32
    %c8_i32 = arith.constant 8 : i32
    %1 = arith.muli %0, %c8_i32 : i32
    %c0_i32 = arith.constant 0 : i32
    %c0_i32_0 = arith.constant 0 : i32
    %c0_i32_1 = arith.constant 0 : i32
    return %arg0, %1, %c0_i32, %c0_i32_0 : i32, i32, i32, i32
  }
  func.func @transform_2(%arg0: i32, %arg1: i32) -> (i32, i32, i32, i32, i32) {
    %c0_i32 = arith.constant 0 : i32
    %c0_i32_0 = arith.constant 0 : i32
    %c0_i32_1 = arith.constant 0 : i32
    %c0_i32_2 = arith.constant 0 : i32
    %c0_i32_3 = arith.constant 0 : i32
    %c0_i32_4 = arith.constant 0 : i32
    return %c0_i32, %c0_i32_0, %c0_i32_1, %c0_i32_2, %c0_i32_3 : i32, i32, i32, i32, i32
  }
  func.func @transform_3(%arg0: i32, %arg1: i32) -> (i32, i32) {
    %c0_i32 = arith.constant 0 : i32
    %c0_i32_0 = arith.constant 0 : i32
    %c0_i32_1 = arith.constant 0 : i32
    return %c0_i32, %c0_i32_0 : i32, i32
  }
  func.func @transform_4(%arg0: i32, %arg1: i32) -> (i32, i32, i32, i32, i32) {
    %c0_i32 = arith.constant 0 : i32
    %c0_i32_0 = arith.constant 0 : i32
    %c0_i32_1 = arith.constant 0 : i32
    %c0_i32_2 = arith.constant 0 : i32
    return %arg0, %arg1, %c0_i32, %c0_i32_0, %c0_i32_1 : i32, i32, i32, i32, i32
  }
}

</mosaic_0001>

<bundles_post_ra>
// kernel: tpu_custom_call.1
= control target key start
LH: loop header
LB: loop body
LE: loop exit
PB: predicated region body
PF: predicated region fallthrough
CT: control target
= control target key end

     0   :  { %9 = vsyncpa [#allocation3], 0  ;;  %s7243_s0 = inlined_call_operand.vmem [shape: f32[2,18,18,64], index: 0, kind: input, shape index: {}]   ;;  %s7244_s1 = inlined_call_operand.vmem [shape: f32[2,18,18,64], index: 1, kind: input, shape index: {}]   ;;  %s7245_s2 = inlined_call_operand.vmem [shape: f32[2,2,2,128,64], index: 2, kind: input, shape index: {}]   ;;  %s7246_s3 = inlined_call_operand.vmem [shape: f32[1,64], index: 3, kind: input, shape index: {}]   ;;  %s7247_s4 = inlined_call_operand.hbm [shape: f32[2,16,2,16,128], index: 4, kind: output, shape index: {}]  }
   0x1   :  { %11 = vsyncpa [#allocation3 + $0x1], 0  ;;  %s5351_s15 = smov 0   ;;  %s5353_s16 = smov 0  }
   0x2   :  { %s5355_s17 = smov 0   ;;  %s5357_s18 = smov 0  }
   0x3   :  { %s5359_s19 = smov 0   ;;  %s5361_s20 = smov 0  }
   0x4 LB: > { %s3479_s21 = sadd.s32 4294967295, %s5320_s20   ;;  %s3480_s22 = sadd.s32 4294967294, %s5320_s20   ;;  %s5320_s20 = sphi %s5361_s20, %s17_s20   ;;  %s5316_s19 = sphi %s5359_s19, %s7398_s19   ;;  %s5312_s18 = sphi %s5357_s18, %s7397_s18   ;;  %s5308_s17 = sphi %s5355_s17, %s7396_s17   ;;  %s5304_s16 = sphi %s5353_s16, %s7395_s16   ;;  %s5300_s15 = sphi %s5351_s15, %s7394_s15  }
   0x5   : > { %s29_s23 = sadd.s32 1, %s5316_s19  ;;  %s140_s24 = sadd.s32 1, %s5308_s17 }
   0x6   : > { %p31_p0 = scmp.ge.s32.totalorder %s29_s23, 2  ;;  %p150_p1 = scmp.ne.s32.totalorder %s5308_s17, %s5304_s16 }
   0x7   : > { %p151_p2 = scmp.eq.s32.totalorder %s3479_s21, 1  ;;  %p156_p3 = scmp.ne.s32.totalorder %s5304_s16, %s5300_s15 }
   0x8   : > { %s7400_s23 = smov (%p31_p0, %s29_s23), 0  ;;  %p157_p5 = scmp.eq.s32.totalorder %s3480_s22, 1 }
   0x9   : > { %p5391_p4 = por %p151_p2, %p150_p1  ;;  %s135_s26 = ssub.s32 %s5316_s19, %s7400_s23 }
   0xa   : > { %p3483_p6 = scmp.ge.s32.totalorder %s5320_s20, 1  ;;  %p138_p7 = scmp.eq.s32.totalorder %s135_s26, 0 }
   0xb   : > { %p5398_p8 = por %p157_p5, %p156_p3  ;;  %p223_p9 = scmp.lt.s32.totalorder %s5320_s20, 3 }
   0xc   : > { %s5404_s28 = scalar_select %p138_p7, %s5308_s17, %s140_s24  }
   0xd   : > { %p224_p10 = pnand %p3483_p6, %p223_p9 }
   0xf   : > { %227 = sbr.rel (%p224_p10) target bundleno = 758 (0x2f6), region = 36 }
  0x16   : > { %p277_p11 = scmp.lt.s32.totalorder %s5312_s18, 1  ;;  %v3487_v0 = vld [vmem:[%s7245_s2 + $0x80] sm:$0xff]  ;;  %v3488_v1 = vld [vmem:[%s7245_s2 + $0x88] sm:$0xff]  ;;  %v3489_v2 = vld [vmem:[%s7245_s2 + $0x90] sm:$0xff]  ;;  %vm416_vm0 = vcmask 1046528   ;;  %s5322_s14 = smov 64  }
  0x17   : > { %v4664_v3 = vpack.c.bf16 %v3488_v1, %v3487_v0  ;;  %v3490_v4 = vld [vmem:[%s7245_s2 + $0x98] sm:$0xff]  ;;  %v3520_v5 = vld [vmem:[%s7245_s2 + $0x180] sm:$0xff]  ;;  %v3521_v6 = vld [vmem:[%s7245_s2 + $0x188] sm:$0xff]  ;;  %vm615_vm1 = vcmask 523264   ;;  %s5323_s13 = smov [#allocation2]  }
  0x18   : > { %s5426_s21 = scalar_select %p277_p11, %s5312_s18, 1  ;;  %v4668_v7 = vpack.c.bf16 %v3490_v4, %v3489_v2  ;;  %v4728_v8 = vpack.c.bf16 %v3521_v6, %v3520_v5  ;;  %v3491_v9 = vld [vmem:[%s7245_s2 + $0xa0] sm:$0xff]  ;;  %v3492_v10 = vld [vmem:[%s7245_s2 + $0xa8] sm:$0xff]  ;;  %v3522_v11 = vld [vmem:[%s7245_s2 + $0x190] sm:$0xff] }
  0x19   : > { %4665 = vmatprep.subr.bf16.mxu0 %v4664_v3  ;;  %v3523_v12 = vld [vmem:[%s7245_s2 + $0x198] sm:$0xff]  ;;  %v3524_v14 = vld [vmem:[%s7245_s2 + $0x1a0] sm:$0xff]  ;;  %v3525_v15 = vld [vmem:[%s7245_s2 + $0x1a8] sm:$0xff]  ;;  %v4672_v16 = vpack.c.bf16 %v3492_v10, %v3491_v9 }
  0x1a   : > { %s5048_s8 = smul.u32 432, %s5426_s21  ;;  %4667 = vmatpush3.bf16.msra.mxu0 %v4664_v3  ;;  %4729 = vmatprep.subr.bf16.mxu1 %v4728_v8  ;;  %v4732_v13 = vpack.c.bf16 %v3523_v12, %v3522_v11  ;;  %v3493_v17 = vld [vmem:[%s7245_s2 + $0xb0] sm:$0xff]  ;;  %v3494_v18 = vld [vmem:[%s7245_s2 + $0xb8] sm:$0xff]  ;;  %v3495_v19 = vld [vmem:[%s7245_s2 + $0xc0] sm:$0xff]  ;;  %v4736_v20 = vpack.c.bf16 %v3525_v15, %v3524_v14  ;;  %s268_s21 = sand.u32 1, %s5304_s16  }
  0x1b   : > { %4669 = vmatprep.subr.bf16.mxu0 %v4668_v7  ;;  %4731 = vmatpush3.bf16.msra.mxu1 %v4728_v8  ;;  %v3496_v21 = vld [vmem:[%s7245_s2 + $0xc8] sm:$0xff]  ;;  %v3526_v22 = vld [vmem:[%s7245_s2 + $0x1b0] sm:$0xff]  ;;  %v3527_v23 = vld [vmem:[%s7245_s2 + $0x1b8] sm:$0xff]  ;;  %v4676_v32 = vpack.c.bf16 %v3494_v18, %v3493_v17 }
  0x1c   : > { %s5461_s6 = scalar_lea.vmem %s7243_s0, %s5048_s8  ;;  %4733 = vmatprep.subr.bf16.mxu1 %v4732_v13  ;;  %v5501_v38 = vpack.c.bf16 %v3496_v21, %v3495_v19  ;;  %v4740_v39 = vpack.c.bf16 %v3527_v23, %v3526_v22  ;;  %v3497_v1 = vld [vmem:[%s7245_s2 + $0xd0] sm:$0xff]  ;;  %v3498_v2 = vld [vmem:[%s7245_s2 + $0xd8] sm:$0xff]  ;;  %s3638_s22 = sadd.s32 384, %s5048_s8 }
  0x1d   : > { %v5473_v24 = vld [vmem:[%s5461_s6 + $0x18] sm:$0xff]  ;;  %v5476_v25 = vld [vmem:[%s5461_s6 + $0x20] sm:$0xff]  ;;  %v5479_v26 = vld [vmem:[%s5461_s6 + $0x28] sm:$0x3]  ;;  %v4684_v15 = vpack.c.bf16 %v3498_v2, %v3497_v1  ;;  %s5737_s5 = scalar_lea.vmem %s7244_s1, %s3638_s22  ;;  %s3484_s8 = sshll.u32 %s268_s21, 9 }
  0x1e   : > { %v422_v27 = vrot.slane %v5473_v24, 1  ;;  %v423_v28 = vrot.slane %v5476_v25, 1  ;;  %v425_v29 = vrot.slane %v5479_v26, 1  ;;  %v5485_v30 = vld [vmem:[%s5461_s6 + $0x38] sm:$0xff]  ;;  %v5488_v31 = vld [vmem:[%s5461_s6 + $0x40] sm:$0x3]  ;;  %4671 = vmatpush3.bf16.msra.mxu0 %v4668_v7 }
  0x1f   : > { %v428_v33 = vrot.slane %v5485_v30, 1  ;;  %v430_v34 = vrot.slane %v5488_v31, 1  ;;  %v5493_v35 = vld [vmem:[%s5461_s6 + $0x30] sm:$0xff]  ;;  %v5496_v36 = vld [vmem:[%s5461_s6 + $0x48] sm:$0xff]  ;;  %4673 = vmatprep.subr.bf16.mxu0 %v4672_v16  ;;  %4735 = vmatpush3.bf16.msra.mxu1 %v4732_v13  ;;  %v5507_v43 = vld [vmem:[%s5461_s6 + $0x58] sm:$0x3] }
  0x20   : > { %v5499_v37 = vld [vmem:[%s5461_s6 + $0x50] sm:$0xff]  ;;  %v424_v40 = vsel %vm416_vm0, %v422_v27, %v423_v28  ;;  %v426_v41 = vsel %vm416_vm0, %v423_v28, %v425_v29  ;;  %v427_v42 = vrot.slane %v5493_v35, 1  ;;  %v432_v44 = vrot.slane %v5496_v36, 1  ;;  %v5511_v45 = vld [vmem:[%s5461_s6 + $0x60] sm:$0xff]  ;;  %v5514_v46 = vld [vmem:[%s5461_s6 + $0x68] sm:$0xff]  ;;  %4737 = vmatprep.subr.bf16.mxu1 %v4736_v20  ;;  %s6805_s30 = scalar_lea.vmem [#allocation2], %s3484_s8 }
  0x21   : > { %v5109_v47 = vpack.i.bf16 %v426_v41, %v424_v40  ;;  %v431_v48 = vsel %vm416_vm0, %v428_v33, %v430_v34  ;;  %v433_v49 = vrot.slane %v5499_v37, 1  ;;  %v435_v50 = vrot.slane %v5507_v43, 1  ;;  %v5520_v51 = vld [vmem:[%s5461_s6 + $0x70] sm:$0x3]  ;;  %v5523_v52 = vld [vmem:[%s5461_s6 + $0x78] sm:$0xff]  ;;  %v5526_v53 = vld [vmem:[%s5461_s6 + $0x80] sm:$0xff] }
  0x22   : > { %v5119_v54 = vpack.i.bf16 %v430_v34, %v431_v48  ;;  %v429_v55 = vsel %vm416_vm0, %v427_v42, %v428_v33  ;;  %v437_v56 = vrot.slane %v5511_v45, 1  ;;  %v438_v57 = vrot.slane %v5514_v46, 1  ;;  %v5532_v58 = vld [vmem:[%s5461_s6 + $0x88] sm:$0x3]  ;;  %v5535_v59 = vld [vmem:[%s5461_s6 + $0x90] sm:$0xff]  ;;  %4675 = vmatpush3.bf16.msra.mxu0 %v4672_v16  ;;  %v5542_v0 = vld [vmem:[%s5461_s6 + $0x98] sm:$0xff] }
  0x23   : > { %5110 = vrot.lane.b32.xlu0 %v5109_v47, %s5322_s14  ;;  %v5114_v60 = vpack.i.bf16 %v429_v55, %v425_v29  ;;  %v434_v61 = vsel %vm416_vm0, %v432_v44, %v433_v49  ;;  %v436_v62 = vsel %vm416_vm0, %v433_v49, %v435_v50  ;;  %v440_v63 = vrot.slane %v5520_v51, 1  ;;  %4677 = vmatprep.subr.bf16.mxu0 %v4676_v32  ;;  %v5555_v7 = vld [vmem:[%s5461_s6 + $0xa0] sm:$0x3]  ;;  %v5561_v11 = vld [vmem:[%s5461_s6 + $0xa8] sm:$0xff]  ;;  %v5564_v12 = vld [vmem:[%s5461_s6 + $0xb0] sm:$0xff]  ;;  %s3376_s7 = sshll.u32 %s6805_s30, 4  ;;  %s7189_s7 = int_to_ptr.vmem [resolvable:$true] %s3376_s7 }
  0x24   : > { %5120 = vrot.lane.b32.xlu1 %v5119_v54, %s5322_s14  ;;  %v5124_v3 = vpack.i.bf16 %v436_v62, %v434_v61  ;;  %v439_v4 = vsel %vm416_vm0, %v437_v56, %v438_v57  ;;  %v442_v5 = vrot.slane %v5523_v52, 1  ;;  %v443_v6 = vrot.slane %v5526_v53, 1  ;;  %4739 = vmatpush3.bf16.msra.mxu1 %v4736_v20  ;;  %v5567_v13 = vld [vmem:[%s5461_s6 + $0xb8] sm:$0x3]  ;;  %v5580_v27 = vld [vmem:[%s5461_s6 + $0xc0] sm:$0xff]  ;;  %v5584_v29 = vld [vmem:[%s5461_s6 + $0xc8] sm:$0xff] }
  0x25   : > { %v441_v8 = vsel %vm416_vm0, %v438_v57, %v440_v63  ;;  %v445_v9 = vrot.slane %v5532_v58, 1  ;;  %v447_v10 = vrot.slane %v5535_v59, 1  ;;  %4741 = vmatprep.subr.bf16.mxu1 %v4740_v39  ;;  %v448_v14 = vrot.slane %v5542_v0, 1  ;;  %v5599_v47 = vld [vmem:[%s5461_s6 + $0xd8] sm:$0xff]  ;;  %v5602_v48 = vld [vmem:[%s5461_s6 + $0xe0] sm:$0xff]  ;;  %s5242_s12 = scalar_lea.vmem %s7189_s7, 8192 }
  0x26   : > { %4679 = vmatpush3.bf16.msra.mxu0 %v4676_v32  ;;  %v5129_v16 = vpack.i.bf16 %v439_v4, %v435_v50  ;;  %v5134_v17 = vpack.i.bf16 %v440_v63, %v441_v8  ;;  %v444_v18 = vsel %vm416_vm0, %v442_v5, %v443_v6  ;;  %v450_v19 = vrot.slane %v5555_v7, 1  ;;  %v5587_v32 = vld [vmem:[%s5461_s6 + $0xd0] sm:$0x3]  ;;  %v5605_v49 = vld [vmem:[%s5461_s6 + $0xe8] sm:$0x3]  ;;  %v5611_v54 = vld [vmem:[%s5461_s6 + $0xf8] sm:$0xff]  ;;  %p5243_p12 = scmp.ne.s32.totalorder %s7189_s7, %s5242_s12 }
  0x27   : > { %5115 = vrot.lane.b32.xlu0 %v5114_v60, %s5322_s14  ;;  %4681 = vmatprep.subr.bf16.mxu0 %v5501_v38  ;;  %v446_v20 = vsel %vm416_vm0, %v443_v6, %v445_v9  ;;  %v452_v21 = vrot.slane %v5561_v11, 1  ;;  %v453_v22 = vrot.slane %v5564_v12, 1  ;;  %v455_v23 = vrot.slane %v5567_v13, 1  ;;  %v5608_v50 = vld [vmem:[%s5461_s6 + $0xf0] sm:$0xff]  ;;  %v5620_v63 = vld [vmem:[%s5461_s6 + $0x100] sm:$0x3] }
  0x28   : > { %5125 = vrot.lane.b32.xlu1 %v5124_v3, %s5322_s14  ;;  %4743 = vmatpush3.bf16.msra.mxu1 %v4740_v39  ;;  %v449_v28 = vsel %vm416_vm0, %v447_v10, %v448_v14  ;;  %v5139_v33 = vpack.i.bf16 %v446_v20, %v444_v18  ;;  %v451_v34 = vsel %vm416_vm0, %v448_v14, %v450_v19  ;;  %v457_v39 = vrot.slane %v5580_v27, 1  ;;  %v5626_v4 = vld [vmem:[%s5461_s6 + $0x108] sm:$0xff]  ;;  %v5629_v5 = vld [vmem:[%s5461_s6 + $0x110] sm:$0xff]  ;;  %v5632_v6 = vld [vmem:[%s5461_s6 + $0x118] sm:$0x3]  ;;  %p5244_p13 = pnand %p5243_p12, %p5391_p4  ;;  %s5246_s22 = sshll.u32 %s5323_s13, 4  ;;  %s5247_s22 = int_to_ptr.vmem [resolvable:$false] %s5246_s22 }
  0x29   : > { %v5144_v40 = vpack.i.bf16 %v449_v28, %v445_v9  ;;  %v454_v41 = vsel %vm416_vm0, %v452_v21, %v453_v22  ;;  %v456_v42 = vsel %vm416_vm0, %v453_v22, %v455_v23  ;;  %v458_v44 = vrot.slane %v5584_v29, 1  ;;  %7312 = vst [vmem:[#allocation5_spill] sm:$0xff] %v5629_v5  ;;  %v3528_v18 = vld [vmem:[%s7245_s2 + $0x1c0] sm:$0xff]  ;;  %v5656_v28 = vld [vmem:[%s5461_s6 + $0x138] sm:$0xff]  ;;  %s5248_s24 = scalar_lea.vmem %s5247_s22, 16384  ;;  %p5249_p1 = scmp.lt.s32.totalorder %s7189_s7, %s5247_s22 }
  0x2a   : > { %4683 = vmatpush3.bf16.msra.mxu0 %v5501_v38  ;;  %v460_v38 = vrot.slane %v5587_v32, 1  ;;  %v5149_v55 = vpack.i.bf16 %v450_v19, %v451_v34  ;;  %v5154_v56 = vpack.i.bf16 %v456_v42, %v454_v41  ;;  %v462_v60 = vrot.slane %v5599_v47, 1  ;;  %v5662_v34 = vld [vmem:[%s5461_s6 + $0x148] sm:$0x3]  ;;  %p5245_p0 = pneg %p5244_p13  ;;  %p5250_p2 = scmp.lt.s32.totalorder %s5248_s24, %s5242_s12 }
  0x2b   : > { %5130 = vrot.lane.b32.xlu0 %v5129_v16, %s5322_s14  ;;  %4685 = vmatprep.subr.bf16.mxu0 %v4684_v15  ;;  %v459_v57 = vsel %vm416_vm0, %v457_v39, %v458_v44  ;;  %v463_v61 = vrot.slane %v5602_v48, 1  ;;  %v465_v62 = vrot.slane %v5605_v49, 1  ;;  %v467_v2 = vrot.slane %v5608_v50, 1  ;;  %v5640_v16 = vld [vmem:[%s5461_s6 + $0x120] sm:$0xff]  ;;  %v3529_v39 = vld [vmem:[%s7245_s2 + $0x1c8] sm:$0xff] }
  0x2c   : > { %5135 = vrot.lane.b32.xlu1 %v5134_v17, %s5322_s14  ;;  %v461_v1 = vsel %vm416_vm0, %v458_v44, %v460_v38  ;;  %v468_v3 = vrot.slane %v5611_v54, 1  ;;  %v5159_v8 = vpack.i.bf16 %v459_v57, %v455_v23  ;;  %v470_v9 = vrot.slane %v5620_v63, 1  ;;  %7313 = vst [vmem:[#allocation6_spill] sm:$0xff] %v5640_v16  ;;  %v5643_v17 = vld [vmem:[%s5461_s6 + $0x128] sm:$0xff]  ;;  %v5653_v23 = vld [vmem:[%s5461_s6 + $0x130] sm:$0x3]  ;;  %p5251_p3 = por %p5250_p2, %p5249_p1 }
  0x2d   : > { %v5164_v10 = vpack.i.bf16 %v460_v38, %v461_v1  ;;  %v464_v14 = vsel %vm416_vm0, %v462_v60, %v463_v61  ;;  %7314 = vst [vmem:[#allocation7_spill] sm:$0xff] %v5643_v17  ;;  %v472_v20 = vrot.slane %v5626_v4, 1  ;;  %v473_v21 = vrot.slane %v5629_v5, 1  ;;  %7315 = vst [vmem:[#allocation8_spill] sm:$0xff] %v5653_v23  ;;  %v3500_v44 = vld [vmem:[%s7245_s2 + $0xe8] sm:$0xff]  ;;  %v3530_v38 = vld [vmem:[%s7245_s2 + $0x1d0] sm:$0xff] }
  0x2e   : > { %4687 = vmatpush3.bf16.msra.mxu0 %v4684_v15  ;;  %v466_v15 = vsel %vm416_vm0, %v463_v61, %v465_v62  ;;  %v469_v19 = vsel %vm416_vm0, %v467_v2, %v468_v3  ;;  %v475_v22 = vrot.slane %v5632_v6, 1  ;;  %v471_v42 = vsel %vm416_vm0, %v468_v3, %v470_v9  ;;  %v5686_v1 = vld [vmem:[%s5461_s6 + $0x150] sm:$0xff]  ;;  %v3502_v3 = vld [vmem:[%s7245_s2 + $0xf8] sm:$0xff]  ;;  %v3533_v5 = vld [vmem:[%s7245_s2 + $0x1e8] sm:$0xff]  ;;  %p5252_p5 = pnand %p5251_p3, %p5245_p0 }
  0x2f   : > { %5140 = vrot.lane.b32.xlu0 %v5139_v33, %s5322_s14  ;;  %v5659_v33 = vld [vmem:[%s5461_s6 + $0x140] sm:$0xff]  ;;  %v5169_v41 = vpack.i.bf16 %v466_v15, %v464_v14  ;;  %v477_v57 = vrot.slane %v5640_v16, 1  ;;  %v478_v60 = vrot.slane %v5643_v17, 1  ;;  %v480_v61 = vrot.slane %v5653_v23, 1  ;;  %7317 = vst [vmem:[#allocation10_spill] sm:$0xff] %v5686_v1  ;;  %v3501_v2 = vld [vmem:[%s7245_s2 + $0xf0] sm:$0xff] }
  0x30   : > { %5145 = vrot.lane.b32.xlu1 %v5144_v40, %s5322_s14  ;;  %7316 = vst [vmem:[#allocation9_spill] sm:$0xff] %v5659_v33  ;;  %v3499_v40 = vld [vmem:[%s7245_s2 + $0xe0] sm:$0xff]  ;;  %v4744_v14 = vpack.c.bf16 %v3529_v39, %v3528_v18  ;;  %v5179_v15 = vpack.i.bf16 %v470_v9, %v471_v42  ;;  %v485_v9 = vrot.slane %v5662_v34, 1  ;;  %v487_v18 = vrot.slane %v5686_v1, 1 }
  0x31   : > { %v4688_v23 = vpack.c.bf16 %v3500_v44, %v3499_v40  ;;  %v3532_v16 = vld [vmem:[%s7245_s2 + $0x1e0] sm:$0xff]  ;;  %v479_v40 = vsel %vm416_vm0, %v477_v57, %v478_v60 }
  0x32   : > { %4745 = vmatprep.subr.bf16.mxu1 %v4744_v14  ;;  %v725_v44 = vld [vmem:[%s7245_s2] sm:$0xff]  ;;  %v4752_v57 = vpack.c.bf16 %v3533_v5, %v3532_v16  ;;  %v5189_v5 = vpack.i.bf16 %v479_v40, %v475_v22  ;;  %v5760_v40 = vld [vmem:[%s5737_s5 + $0x8] sm:$0xff] }
  0x33   : > { %5150 = vrot.lane.b32.xlu0 %v5149_v55, %s5322_s14  ;;  %v3531_v55 = vld [vmem:[%s7245_s2 + $0x1d8] sm:$0xff]  ;;  %4747 = vmatpush3.bf16.msra.mxu1 %v4744_v14 }
  0x34   : > { %5155 = vrot.lane.b32.xlu1 %v5154_v56, %s5322_s14  ;;  %v5174_v56 = vpack.i.bf16 %v469_v19, %v465_v62  ;;  %v476_v62 = vsel %vm416_vm0, %v473_v21, %v475_v22  ;;  %v482_v19 = vrot.slane %v5656_v28, 1  ;;  %v4748_v17 = vpack.c.bf16 %v3531_v55, %v3530_v38  ;;  %v726_v38 = vld [vmem:[%s7245_s2 + $0x8] sm:$0xff]  ;;  %v5723_v55 = vld [vmem:[%s5461_s6 + $0x160] sm:$0x3]  ;;  %4689 = vmatprep.subr.bf16.mxu0 %v4688_v23 }
  0x35   : > { %4691 = vmatpush3.bf16.msra.mxu0 %v4688_v23  ;;  %v490_v1 = vrot.slane %v5723_v55, 1 }
  0x36   : > { %4749 = vmatprep.subr.bf16.mxu1 %v4748_v17 }
  0x37   : > { %5160 = vrot.lane.b32.xlu0 %v5159_v8, %s5322_s14  ;;  %v474_v8 = vsel %vm416_vm0, %v472_v20, %v473_v21  ;;  %v483_v20 = vrot.slane %v5659_v33, 1  ;;  %v4692_v21 = vpack.c.bf16 %v3502_v3, %v3501_v2  ;;  %v5726_v2 = vld [vmem:[%s5461_s6 + $0x168] sm:$0xff]  ;;  %v3534_v3 = vld [vmem:[%s7245_s2 + $0x1f0] sm:$0xff]  ;;  %4751 = vmatpush3.bf16.msra.mxu1 %v4748_v17  ;;  %v3504_v17 = vld [vmem:[%s7245_s2 + $0x100] sm:$0xff] }
  0x38   : > { %5165 = vrot.lane.b32.xlu1 %v5164_v10, %s5322_s14  ;;  %v5697_v10 = vld [vmem:[%s5461_s6 + $0x158] sm:$0xff]  ;;  %v5184_v39 = vpack.i.bf16 %v476_v62, %v474_v8  ;;  %v5746_v62 = vpack.c.bf16 %v726_v38, %v725_v44  ;;  %v492_v33 = vrot.slane %v5726_v2, 1  ;;  %4753 = vmatprep.subr.bf16.mxu1 %v4752_v57  ;;  %v498_v38 = vrot.slane %v5760_v40, 1 }
  0x39   : > { %7318 = vst [vmem:[#allocation11_spill] sm:$0xff] %v5697_v10  ;;  %v488_v42 = vrot.slane %v5697_v10, 1  ;;  %v3535_v8 = vld [vmem:[%s7245_s2 + $0x1f8] sm:$0xff]  ;;  %4693 = vmatprep.subr.bf16.mxu0 %v4692_v21  ;;  %v484_v23 = vsel %vm416_vm0, %v482_v19, %v483_v20  ;;  %v486_v14 = vsel %vm416_vm0, %v483_v20, %v485_v9  ;;  %v3505_v20 = vld [vmem:[%s7245_s2 + $0x108] sm:$0xff] }
  0x3a   : > { %v4756_v19 = vpack.c.bf16 %v3535_v8, %v3534_v3  ;;  %4695 = vmatpush3.bf16.msra.mxu0 %v4692_v21  ;;  %v5778_v3 = vld [vmem:[%s5461_s6] sm:$0xff] }
  0x3b   : > { %5170 = vrot.lane.b32.xlu0 %v5169_v41, %s5322_s14  ;;  %v481_v41 = vsel %vm416_vm0, %v478_v60, %v480_v61  ;;  %v5732_v60 = vld [vmem:[%s5461_s6 + $0x178] sm:$0x3]  ;;  %v489_v10 = vsel %vm416_vm0, %v487_v18, %v488_v42  ;;  %v5199_v18 = vpack.i.bf16 %v486_v14, %v484_v23  ;;  %4697 = vmatprep.subr.bf16.mxu0 %v5746_v62  ;;  %v5784_v23 = vld [vmem:[%s5461_s6 + $0x8] sm:$0xff]  ;;  %v5787_v14 = vld [vmem:[%s5461_s6 + $0x10] sm:$0x3] }
  0x3c   : > { %5175 = vrot.lane.b32.xlu1 %v5174_v56, %s5322_s14  ;;  %v5729_v56 = vld [vmem:[%s5461_s6 + $0x170] sm:$0xff]  ;;  %7319 = vst [vmem:[#allocation12_spill] sm:$0xff] %v5732_v60  ;;  %v5194_v16 = vpack.i.bf16 %v480_v61, %v481_v41  ;;  %v495_v61 = vrot.slane %v5732_v60, 1  ;;  %v5204_v41 = vpack.i.bf16 %v489_v10, %v485_v9  ;;  %v491_v21 = vsel %vm416_vm0, %v488_v42, %v490_v1 }
  0x3d   : > { %v493_v22 = vrot.slane %v5729_v56, 1  ;;  %4755 = vmatpush3.bf16.msra.mxu1 %v4752_v57  ;;  %v5789_v10 = vpack.c.bf16 %v3505_v20, %v3504_v17  ;;  %v5209_v9 = vpack.i.bf16 %v490_v1, %v491_v21  ;;  %v417_v42 = vrot.slane %v5778_v3, 1  ;;  %v360_v21 = vld [vmem:[%s5737_s5 + $0x20] sm:$0xff] }
  0x3e   : > { %4757 = vmatprep.subr.bf16.mxu1 %v4756_v19 }
  0x3f   : > { %5180 = vrot.lane.b32.xlu0 %v5179_v15, %s5322_s14  ;;  %v5757_v15 = vld [vmem:[%s5737_s5] sm:$0xff]  ;;  %v494_v8 = vsel %vm416_vm0, %v492_v33, %v493_v22  ;;  %v496_v60 = vsel %vm416_vm0, %v493_v22, %v495_v61  ;;  %v420_v22 = vrot.slane %v5787_v14, 1 }
  0x40   : > { %5185 = vrot.lane.b32.xlu1 %v5184_v39, %s5322_s14  ;;  %v5763_v39 = vld [vmem:[%s5737_s5 + $0x10] sm:$0x3]  ;;  %v497_v44 = vrot.slane %v5757_v15, 1  ;;  %v5214_v57 = vpack.i.bf16 %v496_v60, %v494_v8 }
  0x41   : > { %4759 = vmatpush3.bf16.msra.mxu1 %v4756_v19  ;;  %v359_v19 = vld [vmem:[%s5737_s5 + $0x18] sm:$0xff] }
  0x42   : > { %v499_v33 = vsel %vm416_vm0, %v497_v44, %v498_v38  ;;  %4761 = vmatprep.subr.bf16.mxu1 %v5789_v10  ;;  %v361_v44 = vld [vmem:[%s5737_s5 + $0x28] sm:$0x3] }
  0x43   : > { %5190 = vrot.lane.b32.xlu0 %v5189_v5, %s5322_s14  ;;  %v500_v5 = vrot.slane %v5763_v39, 1  ;;  %v5219_v1 = vpack.i.bf16 %v499_v33, %v495_v61  ;;  %v502_v61 = vrot.slane %v359_v19, 1  ;;  %v505_v8 = vrot.slane %v361_v44, 1  ;;  %v727_v33 = vld [vmem:[%s7245_s2 + $0x10] sm:$0xff]  ;;  %v3508_v19 = vld [vmem:[%s7245_s2 + $0x120] sm:$0xff] }
  0x44   : > { %5195 = vrot.lane.b32.xlu1 %v5194_v16, %s5322_s14  ;;  %v418_v16 = vrot.slane %v5784_v23, 1 }
  0x45   : > { %v501_v17 = vsel %vm416_vm0, %v498_v38, %v500_v5  ;;  %v503_v38 = vrot.slane %v360_v21, 1  ;;  %v3509_v21 = vld [vmem:[%s7245_s2 + $0x128] sm:$0xff] }
  0x46   : > { %v5224_v60 = vpack.i.bf16 %v500_v5, %v501_v17  ;;  %v419_v20 = vsel %vm416_vm0, %v417_v42, %v418_v16 }
  0x47   : > { %5200 = vrot.lane.b32.xlu0 %v5199_v18, %s5322_s14  ;;  %v421_v18 = vsel %vm416_vm0, %v418_v16, %v420_v22  ;;  %v504_v5 = vsel %vm416_vm0, %v502_v61, %v503_v38  ;;  %v728_v16 = vld [vmem:[%s7245_s2 + $0x18] sm:$0xff] }
  0x48   : > { %5205 = vrot.lane.b32.xlu1 %v5204_v41, %s5322_s14  ;;  %v5229_v41 = vpack.i.bf16 %v421_v18, %v419_v20 }
  0x4b   : > { %5210 = vrot.lane.b32.xlu0 %v5209_v9, %s5322_s14  ;;  %v506_v9 = vsel %vm416_vm0, %v503_v38, %v505_v8  ;;  %v4700_v38 = vpack.c.bf16 %v728_v16, %v727_v33 }
  0x4c   : > { %5215 = vrot.lane.b32.xlu1 %v5214_v57, %s5322_s14  ;;  %v5234_v42 = vpack.i.bf16 %v506_v9, %v504_v5 }
  0x4f   : > { %5220 = vrot.lane.b32.xlu0 %v5219_v1, %s5322_s14 }
  0x50   : > { %5225 = vrot.lane.b32.xlu1 %v5224_v60, %s5322_s14  ;;  %v3506_v60 = vld [vmem:[%s7245_s2 + $0x110] sm:$0xff] }
  0x53   : > { %5230 = vrot.lane.b32.xlu0 %v5229_v41, %s5322_s14  ;;  %v3507_v41 = vld [vmem:[%s7245_s2 + $0x118] sm:$0xff] }
  0x54   : > { %652 = vrot.lane.b32.xlu1 %v420_v22, %s5322_s14 }
  0x57   : > { %5235 = vrot.lane.b32.xlu0 %v5234_v42, %s5322_s14 }
  0x58   : > { %686 = vrot.lane.b32.xlu1 %v505_v8, %s5322_s14 }
  0x95   : > { %v5111_v57 = vpop.permute.xlu0 %5110 }
  0x96   : > { %v5113_v22 = vunpack.i.h.bf16 %v5111_v57  ;;  %v5112_v17 = vunpack.i.l.bf16 %v5111_v57  ;;  %v5121_v1 = vpop.permute.xlu1 %5120 }
  0x97   : > { %v5123_v20 = vunpack.i.h.bf16 %v5121_v1  ;;  %v5122_v18 = vunpack.i.l.bf16 %v5121_v1 }
  0x98   : > { %v5834_v44 = vsel %vm615_vm1, %v5473_v24, %v5112_v17  ;;  %v5838_v61 = vsel %vm615_vm1, %v5476_v25, %v5113_v22  ;;  %v729_v24 = vld [vmem:[%s7245_s2 + $0x20] sm:$0xff]  ;;  %v730_v25 = vld [vmem:[%s7245_s2 + $0x28] sm:$0xff]  ;;  %v5856_v22 = vpack.c.bf16 %v3507_v41, %v3506_v60  ;;  %v5858_v17 = vpack.c.bf16 %v3509_v21, %v3508_v19 }
  0x99   : > { %7320 = vst [vmem:[#allocation13_spill] sm:$0xff] %v5834_v44  ;;  %7321 = vst [vmem:[#allocation14_spill] sm:$0xff] %v5838_v61  ;;  %v708_v8 = vsel %vm615_vm1, %v5488_v31, %v5123_v20  ;;  %v5116_v5 = vpop.permute.xlu0 %5115  ;;  %4056 = vmatprep.mubr.f32.mxu0 %v5834_v44  ;;  %v1299_v9 = vrot.slane %v5834_v44, 1  ;;  %v1300_v42 = vrot.slane %v5838_v61, 1  ;;  %v5847_v57 = vsel %vm615_vm1, %v5485_v30, %v5122_v18 }
  0x9a   : > { %7322 = vst [vmem:[#allocation15_spill] sm:$0xff] %v5847_v57  ;;  %v5118_v31 = vunpack.i.h.bf16 %v5116_v5  ;;  %v5117_v33 = vunpack.i.l.bf16 %v5116_v5  ;;  %4057 = vmatmul.mubr.f32.vlgmr.msra.gmra.mrb[0].mxu0 %v5838_v61  ;;  %v5126_v16 = vpop.permute.xlu1 %5125  ;;  %v1305_v18 = vrot.slane %v5847_v57, 1  ;;  %v1307_v44 = vrot.slane %v708_v8, 1 }
  0x9b   : > { %v5861_v30 = vsel %vm416_vm0, %v1299_v9, %v1300_v42  ;;  %v5128_v1 = vunpack.i.h.bf16 %v5126_v16  ;;  %v5127_v20 = vunpack.i.l.bf16 %v5126_v16  ;;  %4699 = vmatpush3.bf16.msra.mxu0 %v5746_v62  ;;  %v4704_v41 = vpack.c.bf16 %v730_v25, %v729_v24 }
  0x9c   : > { %7323 = vst [vmem:[#allocation16_spill] sm:$0xff] %v5861_v30  ;;  %v707_v5 = vsel %vm615_vm1, %v5479_v26, %v5117_v33  ;;  %4216 = vmatprep.mubr.f32.mxu1 %v5861_v30  ;;  %v5870_v60 = vsel %vm615_vm1, %v5493_v35, %v5118_v31  ;;  %4701 = vmatprep.subr.bf16.mxu0 %v4700_v38 }
  0x9d   : > { %7324 = vst [vmem:[#allocation17_spill] sm:$0xff] %v5870_v60  ;;  %4059 = vmatprep.mubr.f32.mxu0 %v5870_v60  ;;  %v5131_v19 = vpop.permute.xlu0 %5130  ;;  %v1302_v21 = vrot.slane %v707_v5, 1  ;;  %v5875_v9 = vsel %vm615_vm1, %v5496_v36, %v5127_v20  ;;  %v1304_v62 = vrot.slane %v5870_v60, 1  ;;  %v5880_v26 = vsel %vm615_vm1, %v5499_v37, %v5128_v1  ;;  %v731_v5 = vld [vmem:[%s7245_s2 + $0x30] sm:$0xff] }
  0x9e   : > { %7325 = vst [vmem:[#allocation18_spill] sm:$0xff] %v5875_v9  ;;  %4060 = vmatmul.mubr.f32.gmra.mrb[2].mxu0 %v5847_v57  ;;  %v5133_v35 = vunpack.i.h.bf16 %v5131_v19  ;;  %v5132_v8 = vunpack.i.l.bf16 %v5131_v19  ;;  %v5136_v31 = vpop.permute.xlu1 %5135  ;;  %v1309_v24 = vrot.slane %v5875_v9, 1  ;;  %v1310_v25 = vrot.slane %v5880_v26, 1 }
  0x9f   : > { %v5886_v33 = vsel %vm416_vm0, %v1300_v42, %v1302_v21  ;;  %v5138_v36 = vunpack.i.h.bf16 %v5136_v31  ;;  %v5137_v16 = vunpack.i.l.bf16 %v5136_v31  ;;  %4062 = vmatprep.mubr.f32.mxu0 %v5875_v9  ;;  %v5890_v20 = vsel %vm416_vm0, %v1304_v62, %v1305_v18  ;;  %4703 = vmatpush3.bf16.msra.mxu0 %v4700_v38  ;;  %v732_v38 = vld [vmem:[%s7245_s2 + $0x38] sm:$0xff]  ;;  %v3510_v21 = vld [vmem:[%s7245_s2 + $0x130] sm:$0xff] }
  0xa0   : > { %7326 = vst [vmem:[#allocation19_spill] sm:$0xff] %v5886_v33  ;;  %7327 = vst [vmem:[#allocation20_spill] sm:$0xff] %v5890_v20  ;;  %v709_v37 = vsel %vm615_vm1, %v5507_v43, %v5132_v8  ;;  %4217 = vmatmul.mubr.f32.vlgmr.msra.gmra.mrb[0].mxu1 %v5886_v33  ;;  %v5896_v1 = vsel %vm416_vm0, %v1305_v18, %v1307_v44  ;;  %v5900_v42 = vsel %vm615_vm1, %v5511_v45, %v5133_v35 }
  0xa1   : > { %7328 = vst [vmem:[#allocation21_spill] sm:$0xff] %v5900_v42  ;;  %4705 = vmatprep.subr.bf16.mxu0 %v4704_v41  ;;  %v1312_v19 = vrot.slane %v709_v37, 1  ;;  %4763 = vmatpush3.bf16.msra.mxu1 %v5789_v10  ;;  %v5141_v43 = vpop.permute.xlu0 %5140  ;;  %v5912_v44 = vsel %vm615_vm1, %v5514_v46, %v5137_v16  ;;  %v5915_v45 = vsel %vm416_vm0, %v1309_v24, %v1310_v25  ;;  %v1314_v18 = vrot.slane %v5900_v42, 1  ;;  %v3511_v10 = vld [vmem:[%s7245_s2 + $0x138] sm:$0xff] }
  0xa2   : > { %4219 = vmatprep.mubr.f32.mxu1 %v5890_v20  ;;  %7329 = vst [vmem:[#allocation22_spill] sm:$0xff] %v5912_v44  ;;  %v710_v62 = vsel %vm615_vm1, %v5520_v51, %v5138_v36  ;;  %4063 = vmatmul.mubr.f32.gmra.mrb[4].mxu0 %v5880_v26  ;;  %v5143_v46 = vunpack.i.h.bf16 %v5141_v43  ;;  %v5142_v35 = vunpack.i.l.bf16 %v5141_v43  ;;  %v5146_v8 = vpop.permute.xlu1 %5145  ;;  %v1315_v31 = vrot.slane %v5912_v44, 1  ;;  %v733_v43 = vld [vmem:[%s7245_s2 + $0x40] sm:$0xff] }
  0xa3   : > { %4765 = vmatprep.subr.bf16.mxu1 %v5856_v22  ;;  %4065 = vmatprep.mubr.f32.mxu0 %v5900_v42  ;;  %v5148_v24 = vunpack.i.h.bf16 %v5146_v8  ;;  %v5147_v16 = vunpack.i.l.bf16 %v5146_v8  ;;  %v4708_v37 = vpack.c.bf16 %v732_v38, %v731_v5  ;;  %v5932_v20 = vsel %vm416_vm0, %v1310_v25, %v1312_v19  ;;  %v734_v8 = vld [vmem:[%s7245_s2 + $0x48] sm:$0xff]  ;;  %v3512_v19 = vld [vmem:[%s7245_s2 + $0x140] sm:$0xff] }
  0xa4   : > { %4707 = vmatpush3.bf16.msra.mxu0 %v4704_v41  ;;  %4220 = vmatmul.mubr.f32.gmra.mrb[2].mxu1 %v5896_v1  ;;  %v5936_v51 = vsel %vm615_vm1, %v5523_v52, %v5142_v35  ;;  %v4772_v36 = vpack.c.bf16 %v3511_v10, %v3510_v21  ;;  %v1317_v41 = vrot.slane %v710_v62, 1  ;;  %v5949_v52 = vsel %vm416_vm0, %v1314_v18, %v1315_v31  ;;  %v3513_v21 = vld [vmem:[%s7245_s2 + $0x148] sm:$0xff] }
  0xa5   : > { %4222 = vmatprep.mubr.f32.mxu1 %v5915_v45  ;;  %v711_v25 = vsel %vm615_vm1, %v5532_v58, %v5147_v16  ;;  %4767 = vmatpush3.bf16.msra.mxu1 %v5856_v22  ;;  %v5151_v5 = vpop.permute.xlu0 %5150  ;;  %7330 = vst [vmem:[#allocation23_spill] sm:$0xff] %v5949_v52  ;;  %v5953_v38 = vsel %vm615_vm1, %v5526_v53, %v5143_v46  ;;  %v1319_v18 = vrot.slane %v5936_v51, 1 }
  0xa6   : > { %7331 = vst [vmem:[#allocation24_spill] sm:$0xff] %v5953_v38  ;;  %4066 = vmatmul.mubr.f32.gmra.mrb[6].mxu0 %v5912_v44  ;;  %v5153_v58 = vunpack.i.h.bf16 %v5151_v5  ;;  %v5152_v22 = vunpack.i.l.bf16 %v5151_v5  ;;  %v5156_v10 = vpop.permute.xlu1 %5155  ;;  %v1320_v62 = vrot.slane %v5953_v38, 1  ;;  %4769 = vmatprep.subr.bf16.mxu1 %v5858_v17  ;;  %v5968_v53 = vsel %vm615_vm1, %v5535_v59, %v5148_v24  ;;  %v735_v44 = vld [vmem:[%s7245_s2 + $0x50] sm:$0xff]  ;;  %v736_v59 = vld [vmem:[%s7245_s2 + $0x58] sm:$0xff] }
  0xa7   : > { %4068 = vmatprep.mubr.f32.mxu0 %v5936_v51  ;;  %7332 = vst [vmem:[#allocation25_spill] sm:$0xff] %v5968_v53  ;;  %4709 = vmatprep.subr.bf16.mxu0 %v4708_v37  ;;  %v4712_v46 = vpack.c.bf16 %v734_v8, %v733_v43  ;;  %v5157_v35 = vunpack.i.l.bf16 %v5156_v10  ;;  %v4776_v5 = vpack.c.bf16 %v3513_v21, %v3512_v19  ;;  %v1322_v24 = vrot.slane %v711_v25, 1 }
  0xa8   : > { %4223 = vmatmul.mubr.f32.gmra.mrb[4].mxu1 %v5932_v20  ;;  %v5973_v16 = vsel %vm615_vm1, %v5542_v0, %v5152_v22  ;;  %4711 = vmatpush3.bf16.msra.mxu0 %v4708_v37  ;;  %v712_v43 = vsel %vm615_vm1, %v5555_v7, %v5153_v58  ;;  %v5985_v8 = vsel %vm416_vm0, %v1315_v31, %v1317_v41  ;;  %v5158_v0 = vunpack.i.h.bf16 %v5156_v10  ;;  %v3514_v31 = vld [vmem:[%s7245_s2 + $0x150] sm:$0xff] }
  0xa9   : > { %7333 = vst [vmem:[#allocation26_spill] sm:$0xff] %v5973_v16  ;;  %4225 = vmatprep.mubr.f32.mxu1 %v5949_v52  ;;  %v5161_v19 = vpop.permute.xlu0 %5160  ;;  %4771 = vmatpush3.bf16.msra.mxu1 %v5858_v17  ;;  %v5990_v37 = vsel %vm416_vm0, %v1319_v18, %v1320_v62  ;;  %v1324_v25 = vrot.slane %v5968_v53, 1  ;;  %v1325_v7 = vrot.slane %v5973_v16, 1  ;;  %v3515_v17 = vld [vmem:[%s7245_s2 + $0x158] sm:$0xff]  ;;  %v4716_v10 = vpack.c.bf16 %v736_v59, %v735_v44  ;;  %v3516_v52 = vld [vmem:[%s7245_s2 + $0x160] sm:$0xff] }
  0xaa   : > { %4069 = vmatmul.mubr.f32.gmra.mrb[8].mxu0 %v5953_v38  ;;  %v5162_v21 = vunpack.i.l.bf16 %v5161_v19  ;;  %v5166_v22 = vpop.permute.xlu1 %5165  ;;  %4773 = vmatprep.subr.bf16.mxu1 %v4772_v36  ;;  %v5163_v41 = vunpack.i.h.bf16 %v5161_v19  ;;  %v1327_v18 = vrot.slane %v712_v43, 1  ;;  %v6004_v38 = vsel %vm615_vm1, %v5561_v11, %v5157_v35  ;;  %v3517_v11 = vld [vmem:[%s7245_s2 + $0x168] sm:$0xff] }
  0xab   : > { %4071 = vmatprep.mubr.f32.mxu0 %v5968_v53  ;;  %v5167_v58 = vunpack.i.l.bf16 %v5166_v22  ;;  %4713 = vmatprep.subr.bf16.mxu0 %v4712_v46  ;;  %7334 = vst [vmem:[#allocation27_spill] sm:$0xff] %v6004_v38  ;;  %v6011_v53 = vsel %vm416_vm0, %v1320_v62, %v1322_v24  ;;  %v5168_v19 = vunpack.i.h.bf16 %v5166_v22  ;;  %v6015_v44 = vsel %vm615_vm1, %v5564_v12, %v5158_v0  ;;  %v738_v62 = vld [vmem:[%s7245_s2 + $0x68] sm:$0xff] }
  0xac   : > { %4226 = vmatmul.mubr.f32.gmra.mrb[6].mxu1 %v5985_v8  ;;  %4715 = vmatpush3.bf16.msra.mxu0 %v4712_v46  ;;  %7335 = vst [vmem:[#allocation28_spill] sm:$0xff] %v6015_v44  ;;  %v4780_v43 = vpack.c.bf16 %v3515_v17, %v3514_v31  ;;  %v737_v46 = vld [vmem:[%s7245_s2 + $0x60] sm:$0xff]  ;;  %v713_v12 = vsel %vm615_vm1, %v5567_v13, %v5162_v21  ;;  %v1329_v35 = vrot.slane %v6004_v38, 1  ;;  %v1330_v24 = vrot.slane %v6015_v44, 1 }
  0xad   : > { %4228 = vmatprep.mubr.f32.mxu1 %v5990_v37  ;;  %v5171_v59 = vpop.permute.xlu0 %5170  ;;  %4775 = vmatpush3.bf16.msra.mxu1 %v4772_v36  ;;  %v6030_v36 = vsel %vm416_vm0, %v1324_v25, %v1325_v7  ;;  %v6037_v22 = vsel %vm615_vm1, %v5580_v27, %v5163_v41  ;;  %v6041_v31 = vsel %vm615_vm1, %v5584_v29, %v5167_v58 }
  0xae   : > { %4072 = vmatmul.mubr.f32.gmra.mrb[10].mxu0 %v5973_v16  ;;  %7336 = vst [vmem:[#allocation29_spill] sm:$0xff] %v6030_v36  ;;  %v5176_v0 = vpop.permute.xlu1 %5175  ;;  %4777 = vmatprep.subr.bf16.mxu1 %v4776_v5  ;;  %7337 = vst [vmem:[#allocation30_spill] sm:$0xff] %v6037_v22  ;;  %v6045_v13 = vsel %vm416_vm0, %v1325_v7, %v1327_v18  ;;  %v5172_v21 = vunpack.i.l.bf16 %v5171_v59  ;;  %v4784_v25 = vpack.c.bf16 %v3517_v11, %v3516_v52  ;;  %v740_v7 = vld [vmem:[%s7245_s2 + $0x78] sm:$0xff]  ;;  %v3518_v52 = vld [vmem:[%s7245_s2 + $0x170] sm:$0xff] }
  0xaf   : > { %4074 = vmatprep.mubr.f32.mxu0 %v6004_v38  ;;  %4717 = vmatprep.subr.bf16.mxu0 %v4716_v10  ;;  %v4720_v17 = vpack.c.bf16 %v738_v62, %v737_v46  ;;  %v739_v38 = vld [vmem:[%s7245_s2 + $0x70] sm:$0xff]  ;;  %v1332_v16 = vrot.slane %v713_v12, 1  ;;  %v714_v27 = vsel %vm615_vm1, %v5587_v32, %v5168_v19  ;;  %v5173_v29 = vunpack.i.h.bf16 %v5171_v59  ;;  %v3519_v18 = vld [vmem:[%s7245_s2 + $0x178] sm:$0xff] }
  0xb0   : > { %4229 = vmatmul.mubr.f32.gmra.mrb[8].mxu1 %v6011_v53  ;;  %v5177_v41 = vunpack.i.l.bf16 %v5176_v0  ;;  %v6064_v32 = vsel %vm416_vm0, %v1329_v35, %v1330_v24  ;;  %v5178_v19 = vunpack.i.h.bf16 %v5176_v0  ;;  %v1335_v59 = vrot.slane %v6041_v31, 1  ;;  %4719 = vmatpush3.bf16.msra.mxu0 %v4716_v10 }
  0xb1   : > { %4231 = vmatprep.mubr.f32.mxu1 %v6030_v36  ;;  %v5181_v58 = vpop.permute.xlu0 %5180  ;;  %4779 = vmatpush3.bf16.msra.mxu1 %v4776_v5  ;;  %v1334_v5 = vrot.slane %v6037_v22, 1  ;;  %v1337_v62 = vrot.slane %v714_v27, 1  ;;  %v6074_v12 = vsel %vm615_vm1, %v5599_v47, %v5172_v21  ;;  %v4724_v35 = vpack.c.bf16 %v740_v7, %v739_v38  ;;  %v3584_v47 = vld [vmem:[%s7245_s2 + $0x380] sm:$0xff]  ;;  %v3585_v38 = vld [vmem:[%s7245_s2 + $0x388] sm:$0xff] }
  0xb2   : > { %4075 = vmatmul.mubr.f32.gmra.mrb[12].mxu0 %v6015_v44  ;;  %v6068_v11 = vpop.permute.xlu1 %5185  ;;  %4781 = vmatprep.subr.bf16.mxu1 %v4780_v43  ;;  %v5182_v46 = vunpack.i.l.bf16 %v5181_v58  ;;  %v4788_v0 = vpack.c.bf16 %v3519_v18, %v3518_v52  ;;  %v715_v44 = vsel %vm615_vm1, %v5605_v49, %v5177_v41  ;;  %v6080_v36 = vsel %vm416_vm0, %v1330_v24, %v1332_v16  ;;  %v3552_v7 = vld [vmem:[%s7245_s2 + $0x280] sm:$0xff] }
  0xb3   : > { %4077 = vmatprep.mubr.f32.mxu0 %v6037_v22  ;;  %4721 = vmatprep.subr.bf16.mxu0 %v4720_v17  ;;  %v5183_v22 = vunpack.i.h.bf16 %v5181_v58  ;;  %v6084_v10 = vsel %vm615_vm1, %v5602_v48, %v5173_v29  ;;  %v6094_v49 = vsel %vm416_vm0, %v1334_v5, %v1335_v59  ;;  %v6098_v16 = vsel %vm615_vm1, %v5608_v50, %v5178_v19 }
  0xb4   : > { %4232 = vmatmul.mubr.f32.gmra.mrb[10].mxu1 %v6045_v13  ;;  %v1339_v48 = vrot.slane %v6074_v12, 1  ;;  %v6105_v24 = vsel %vm615_vm1, %v5611_v54, %v5182_v46  ;;  %4723 = vmatpush3.bf16.msra.mxu0 %v4720_v17  ;;  %v1342_v29 = vrot.slane %v715_v44, 1  ;;  %v6109_v41 = vsel %vm416_vm0, %v1335_v59, %v1337_v62  ;;  %v3553_v54 = vld [vmem:[%s7245_s2 + $0x288] sm:$0xff] }
  0xb5   : > { %4234 = vmatprep.mubr.f32.mxu1 %v6064_v32  ;;  %v5191_v27 = vpop.permute.xlu0 %5190  ;;  %4783 = vmatpush3.bf16.msra.mxu1 %v4780_v43  ;;  %v1340_v43 = vrot.slane %v6084_v10, 1  ;;  %v5187_v50 = vunpack.i.l.bf16 %v6068_v11  ;;  %v6112_v58 = vpack.c.bf16 %v3585_v38, %v3584_v47  ;;  %v716_v44 = vsel %vm615_vm1, %v5620_v63, %v5183_v22 }
  0xb6   : > { %4078 = vmatmul.mubr.f32.gmra.mrb[14].mxu0 %v6041_v31  ;;  %4785 = vmatprep.subr.bf16.mxu1 %v4784_v25  ;;  %v5196_v21 = vpop.permute.xlu1 %5195  ;;  %v5188_v17 = vunpack.i.h.bf16 %v6068_v11  ;;  %v5192_v52 = vunpack.i.l.bf16 %v5191_v27  ;;  %v1344_v18 = vrot.slane %v6098_v16, 1  ;;  %v5193_v5 = vunpack.i.h.bf16 %v5191_v27 }
  0xb7   : > { %4080 = vmatprep.mubr.f32.mxu0 %v6074_v12  ;;  %4725 = vmatprep.subr.bf16.mxu0 %v4724_v35  ;;  %v6127_v19 = vsel %vm416_vm0, %v1339_v48, %v1340_v43  ;;  %v5197_v59 = vunpack.i.l.bf16 %v5196_v21  ;;  %v1345_v46 = vrot.slane %v6105_v24, 1  ;;  %v6131_v63 = vpack.c.bf16 %v3553_v54, %v3552_v7  ;;  %v7342_v54 = vld [vmem:[#allocation8_spill] sm:$0xff] }
  0xb8   : > { %4235 = vmatmul.mubr.f32.gmra.mrb[12].mxu1 %v6080_v36  ;;  %4727 = vmatpush3.bf16.msra.mxu0 %v4724_v35  ;;  %v1347_v22 = vrot.slane %v716_v44, 1  ;;  %v6136_v11 = vsel %vm615_vm1, %v5626_v4, %v5187_v50  ;;  %v717_v27 = vsel %vm615_vm1, %v5632_v6, %v5192_v52  ;;  %v6142_v38 = vsel %vm416_vm0, %v1340_v43, %v1342_v29  ;;  %v7338_v35 = vld [vmem:[#allocation5_spill] sm:$0xff]  ;;  %v7341_v6 = vld [vmem:[#allocation7_spill] sm:$0xff] }
  0xb9   : > { %4237 = vmatprep.mubr.f32.mxu1 %v6094_v49  ;;  %4787 = vmatpush3.bf16.msra.mxu1 %v4784_v25  ;;  %v5201_v62 = vpop.permute.xlu0 %5200  ;;  %v5198_v25 = vunpack.i.h.bf16 %v5196_v21  ;;  %v6146_v48 = vsel %vm615_vm1, %v7338_v35, %v5188_v17  ;;  %v1349_v7 = vrot.slane %v6136_v11, 1  ;;  %v6151_v4 = vsel %vm416_vm0, %v1344_v18, %v1345_v46  ;;  %v7339_v21 = vld [vmem:[#allocation6_spill] sm:$0xff] }
  0xba   : > { %4081 = vmatmul.mubr.f32.gmra.mrb[16].mxu0 %v6084_v10  ;;  %4789 = vmatprep.subr.bf16.mxu1 %v4788_v0  ;;  %v5206_v47 = vpop.permute.xlu1 %5205  ;;  %v6155_v50 = vsel %vm615_vm1, %v7339_v21, %v5193_v5  ;;  %v6159_v43 = vsel %vm615_vm1, %v7341_v6, %v5197_v59  ;;  %v1350_v29 = vrot.slane %v6146_v48, 1  ;;  %v6169_v17 = vsel %vm416_vm0, %v1345_v46, %v1347_v22 }
  0xbb   : > { %4083 = vmatprep.mubr.f32.mxu0 %v6098_v16  ;;  %7340 = vst [vmem:[#allocation5_spill] sm:$0xff] %v6155_v50  ;;  %4793 = vmatprep.subr.bf16.mxu0 %v6131_v63  ;;  %v718_v44 = vsel %vm615_vm1, %v7342_v54, %v5198_v25  ;;  %7343 = vst [vmem:[#allocation6_spill] sm:$0xff] %v6169_v17  ;;  %v5202_v52 = vunpack.i.l.bf16 %v5201_v62  ;;  %v5203_v5 = vunpack.i.h.bf16 %v5201_v62  ;;  %v5207_v59 = vunpack.i.l.bf16 %v5206_v47 }
  0xbc   : > { %4238 = vmatmul.mubr.f32.gmra.mrb[14].mxu1 %v6109_v41  ;;  %v1354_v35 = vrot.slane %v6155_v50, 1  ;;  %v1355_v21 = vrot.slane %v6159_v43, 1  ;;  %v5208_v6 = vunpack.i.h.bf16 %v5206_v47  ;;  %v1357_v22 = vrot.slane %v718_v44, 1 }
  0xbd   : > { %4240 = vmatprep.mubr.f32.mxu1 %v6127_v19  ;;  %4791 = vmatpush3.bf16.msra.mxu1 %v4788_v0  ;;  %v1352_v0 = vrot.slane %v717_v27, 1  ;;  %v5211_v18 = vpop.permute.xlu0 %5210  ;;  %v6176_v27 = vsel %vm416_vm0, %v1349_v7, %v1350_v29  ;;  %v6182_v62 = vsel %vm615_vm1, %v5656_v28, %v5202_v52  ;;  %v719_v54 = vsel %vm615_vm1, %v5662_v34, %v5207_v59  ;;  %v7349_v28 = vld [vmem:[#allocation10_spill] sm:$0xff] }
  0xbe   : > { %4084 = vmatmul.mubr.f32.gmra.mrb[18].mxu0 %v6105_v24  ;;  %4857 = vmatprep.subr.bf16.mxu1 %v6112_v58  ;;  %7344 = vst [vmem:[#allocation7_spill] sm:$0xff] %v6176_v27  ;;  %v5216_v25 = vpop.permute.xlu1 %5215  ;;  %v5212_v46 = vunpack.i.l.bf16 %v5211_v18  ;;  %7345 = vst [vmem:[#allocation8_spill] sm:$0xff] %v6182_v62  ;;  %v6191_v47 = vsel %vm416_vm0, %v1354_v35, %v1355_v21  ;;  %v6200_v52 = vsel %vm615_vm1, %v7349_v28, %v5208_v6 }
  0xbf   : > { %4086 = vmatprep.mubr.f32.mxu0 %v6136_v11  ;;  %v6188_v7 = vsel %vm416_vm0, %v1350_v29, %v1352_v0  ;;  %7347 = vst [vmem:[#allocation32_spill] sm:$0xff] %v6191_v47  ;;  %v7350_v29 = vld [vmem:[#allocation11_spill] sm:$0xff]  ;;  %v6212_v35 = vsel %vm416_vm0, %v1355_v21, %v1357_v22  ;;  %v5218_v6 = vunpack.i.h.bf16 %v5216_v25  ;;  %v1364_v28 = vrot.slane %v6200_v52, 1 }
  0xc0   : > { %4241 = vmatmul.mubr.f32.gmra.mrb[16].mxu1 %v6142_v38  ;;  %7346 = vst [vmem:[#allocation31_spill] sm:$0xff] %v6188_v7  ;;  %v6207_v0 = vsel %vm615_vm1, %v7350_v29, %v5212_v46 }
  0xc1   : > { %4243 = vmatprep.mubr.f32.mxu1 %v6151_v4  ;;  %v5221_v59 = vpop.permute.xlu0 %5220 }
  0xc2   : > { %4087 = vmatmul.mubr.f32.gmra.mrb[20].mxu0 %v6146_v48  ;;  %v5222_v29 = vunpack.i.l.bf16 %v5221_v59 }
  0xc3   : > { %4089 = vmatprep.mubr.f32.mxu0 %v6155_v50  ;;  %v7348_v50 = vld [vmem:[#allocation9_spill] sm:$0xff] }
  0xc4   : > { %4244 = vmatmul.mubr.f32.gmra.mrb[18].mxu1 %v6169_v17  ;;  %v6195_v44 = vsel %vm615_vm1, %v7348_v50, %v5203_v5  ;;  %v5213_v17 = vunpack.i.h.bf16 %v5211_v18  ;;  %v5217_v50 = vunpack.i.l.bf16 %v5216_v25  ;;  %v5226_v5 = vpop.permute.xlu1 %5225  ;;  %v1362_v18 = vrot.slane %v719_v54, 1  ;;  %7351 = vst [vmem:[#allocation9_spill] sm:$0xff] %v6212_v35 }
  0xc5   : > { %4246 = vmatprep.mubr.f32.mxu1 %v6176_v27  ;;  %v1359_v27 = vrot.slane %v6182_v62, 1  ;;  %v1360_v34 = vrot.slane %v6195_v44, 1  ;;  %v5223_v54 = vunpack.i.h.bf16 %v5221_v59  ;;  %v7353_v59 = vld [vmem:[#allocation12_spill] sm:$0xff] }
  0xc6   : > { %4090 = vmatmul.mubr.f32.gmra.mrb[22].mxu0 %v6159_v43  ;;  %v6226_v21 = vsel %vm615_vm1, %v5726_v2, %v5217_v50  ;;  %v5228_v2 = vunpack.i.h.bf16 %v5226_v5 }
  0xc7   : > { %4092 = vmatprep.mubr.f32.mxu0 %v6182_v62  ;;  %v720_v62 = vsel %vm615_vm1, %v5723_v55, %v5213_v17  ;;  %v6219_v46 = vsel %vm416_vm0, %v1359_v27, %v1360_v34  ;;  %v6230_v55 = vsel %vm416_vm0, %v1360_v34, %v1362_v18  ;;  %v6234_v17 = vsel %vm615_vm1, %v5729_v56, %v5218_v6  ;;  %v5231_v27 = vpop.permute.xlu0 %5230 }
  0xc8   : > { %4247 = vmatmul.mubr.f32.gmra.mrb[20].mxu1 %v6188_v7  ;;  %v1365_v7 = vrot.slane %v6207_v0, 1  ;;  %v1367_v25 = vrot.slane %v720_v62, 1  ;;  %7352 = vst [vmem:[#allocation10_spill] sm:$0xff] %v6234_v17  ;;  %v1369_v22 = vrot.slane %v6226_v21, 1  ;;  %v1370_v50 = vrot.slane %v6234_v17, 1 }
  0xc9   : > { %4249 = vmatprep.mubr.f32.mxu1 %v6191_v47  ;;  %v5227_v47 = vunpack.i.l.bf16 %v5226_v5  ;;  %v6247_v56 = vsel %vm615_vm1, %v5757_v15, %v5223_v54  ;;  %v5232_v18 = vunpack.i.l.bf16 %v5231_v27 }
  0xca   : > { %4093 = vmatmul.mubr.f32.gmra.mrb[24].mxu0 %v6195_v44  ;;  %v6241_v62 = vsel %vm416_vm0, %v1364_v28, %v1365_v7  ;;  %7354 = vst [vmem:[#allocation11_spill] sm:$0xff] %v6247_v56  ;;  %v6256_v5 = vsel %vm416_vm0, %v1365_v7, %v1367_v25  ;;  %v5233_v28 = vunpack.i.h.bf16 %v5231_v27  ;;  %v6262_v15 = vsel %vm416_vm0, %v1369_v22, %v1370_v50  ;;  %v3554_v27 = vld [vmem:[%s7245_s2 + $0x290] sm:$0xff]  ;;  %v3555_v22 = vld [vmem:[%s7245_s2 + $0x298] sm:$0xff] }
  0xcb   : > { %4095 = vmatprep.mubr.f32.mxu0 %v6200_v52  ;;  %v6251_v34 = vsel %vm615_vm1, %v5760_v40, %v5227_v47  ;;  %7356 = vst [vmem:[#allocation33_spill] sm:$0xff] %v6256_v5  ;;  %7357 = vst [vmem:[#allocation34_spill] sm:$0xff] %v6262_v15  ;;  %v1409_v40 = vrot.slane %v6247_v56, 1  ;;  %v616_v7 = vsel %vm615_vm1, %v5778_v3, %v5232_v18 }
  0xcc   : > { %4250 = vmatmul.mubr.f32.gmra.mrb[22].mxu1 %v6212_v35  ;;  %v721_v35 = vsel %vm615_vm1, %v7353_v59, %v5222_v29  ;;  %7355 = vst [vmem:[#allocation12_spill] sm:$0xff] %v6251_v34  ;;  %v722_v29 = vsel %vm615_vm1, %v5763_v39, %v5228_v2  ;;  %v1410_v47 = vrot.slane %v6251_v34, 1  ;;  %v617_v54 = vsel %vm615_vm1, %v5784_v23, %v5233_v28  ;;  %v3556_v28 = vld [vmem:[%s7245_s2 + $0x2a0] sm:$0xff] }
  0xcd   : > { %4252 = vmatprep.mubr.f32.mxu1 %v6219_v46  ;;  %v1372_v6 = vrot.slane %v721_v35, 1  ;;  %v653_v35 = vpop.permute.xlu1 %652  ;;  %v1412_v25 = vrot.slane %v722_v29, 1  ;;  %v1294_v3 = vrot.slane %v616_v7, 1  ;;  %v4796_v23 = vpack.c.bf16 %v3555_v22, %v3554_v27  ;;  %v3557_v29 = vld [vmem:[%s7245_s2 + $0x2a8] sm:$0xff]  ;;  %v3559_v27 = vld [vmem:[%s7245_s2 + $0x2b8] sm:$0xff] }
  0xce   : > { %4096 = vmatmul.mubr.f32.gmra.mrb[26].mxu0 %v6207_v0  ;;  %v6284_v59 = vsel %vm416_vm0, %v1409_v40, %v1410_v47  ;;  %v706_v2 = vsel %vm615_vm1, %v5787_v14, %v653_v35  ;;  %v7360_v40 = vld [vmem:[#allocation13_spill] sm:$0xff]  ;;  %v3586_v35 = vld [vmem:[%s7245_s2 + $0x390] sm:$0xff] }
  0xcf   : > { %4098 = vmatprep.mubr.f32.mxu0 %v6226_v21  ;;  %v6272_v39 = vsel %vm416_vm0, %v1370_v50, %v1372_v6  ;;  %7358 = vst [vmem:[#allocation35_spill] sm:$0xff] %v6284_v59  ;;  %v1295_v50 = vrot.slane %v617_v54, 1  ;;  %v1297_v18 = vrot.slane %v706_v2, 1  ;;  %v6291_v6 = vsel %vm416_vm0, %v1410_v47, %v1412_v25  ;;  %v3587_v47 = vld [vmem:[%s7245_s2 + $0x398] sm:$0xff]  ;;  %v3558_v25 = vld [vmem:[%s7245_s2 + $0x2b0] sm:$0xff] }
  0xd0   : > { %4253 = vmatmul.mubr.f32.gmra.mrb[24].mxu1 %v6230_v55  ;;  %7359 = vst [vmem:[#allocation36_spill] sm:$0xff] %v6291_v6  ;;  %v4860_v22 = vpack.c.bf16 %v3587_v47, %v3586_v35  ;;  %v4804_v2 = vpack.c.bf16 %v3559_v27, %v3558_v25  ;;  %v3562_v35 = vld [vmem:[%s7245_s2 + $0x2d0] sm:$0xff]  ;;  %v3563_v47 = vld [vmem:[%s7245_s2 + $0x2d8] sm:$0xff]  ;;  %v3593_v25 = vld [vmem:[%s7245_s2 + $0x3c8] sm:$0xff] }
  0xd1   : > { %4255 = vmatprep.mubr.f32.mxu1 %v6241_v62  ;;  %v1296_v14 = vsel %vm416_vm0, %v1294_v3, %v1295_v50  ;;  %v3589_v3 = vld [vmem:[%s7245_s2 + $0x3a8] sm:$0xff]  ;;  %v4812_v27 = vpack.c.bf16 %v3563_v47, %v3562_v35  ;;  %v3567_v35 = vld [vmem:[%s7245_s2 + $0x2f8] sm:$0xff] }
  0xd2   : > { %4099 = vmatmul.mubr.f32.gmra.mrb[28].mxu0 %v6234_v17  ;;  %v7364_v47 = vld [vmem:[#allocation24_spill] sm:$0xff] }
  0xd3   : > { %4101 = vmatprep.mubr.f32.mxu0 %v6247_v56 }
  0xd4   : > { %4256 = vmatmul.mubr.f32.gmra.mrb[26].mxu1 %v6256_v5 }
  0xd5   : > { %4258 = vmatprep.mubr.f32.mxu1 %v6262_v15 }
  0xd6   : > { %4102 = vmatmul.mubr.f32.gmra.mrb[30].mxu0 %v6251_v34  ;;  %v3541_v34 = vld [vmem:[%s7245_s2 + $0x228] sm:$0xff] }
  0xd7   : > { %4136 = vmatprep.mubr.f32.mxu0 %v616_v7  ;;  %v4800_v7 = vpack.c.bf16 %v3557_v29, %v3556_v28 }
  0xd8   : > { %4259 = vmatmul.mubr.f32.gmra.mrb[28].mxu1 %v6272_v39 }
  0xd9   : > { %4261 = vmatprep.mubr.f32.mxu1 %v6284_v59  ;;  %v3540_v59 = vld [vmem:[%s7245_s2 + $0x220] sm:$0xff] }
  0xda   : > { %4137 = vmatmul.mubr.f32.vlgmr.msra.gmra.mrb[0].mxu0 %v617_v54  ;;  %v1298_v54 = vsel %vm416_vm0, %v1295_v50, %v1297_v18  ;;  %v3560_v50 = vld [vmem:[%s7245_s2 + $0x2c0] sm:$0xff]  ;;  %v3561_v18 = vld [vmem:[%s7245_s2 + $0x2c8] sm:$0xff] }
  0xdb   : > { %4139 = vmatprep.mubr.f32.mxu0 %v7360_v40  ;;  %4795 = vmatpush3.bf16.msra.mxu0 %v6131_v63  ;;  %v3588_v63 = vld [vmem:[%s7245_s2 + $0x3a0] sm:$0xff]  ;;  %v4808_v29 = vpack.c.bf16 %v3561_v18, %v3560_v50  ;;  %v3595_v18 = vld [vmem:[%s7245_s2 + $0x3d8] sm:$0xff] }
  0xdc   : > { %4262 = vmatmul.mubr.f32.gmra.mrb[30].mxu1 %v6291_v6  ;;  %4797 = vmatprep.subr.bf16.mxu0 %v4796_v23  ;;  %v4864_v28 = vpack.c.bf16 %v3589_v3, %v3588_v63  ;;  %v3565_v63 = vld [vmem:[%s7245_s2 + $0x2e8] sm:$0xff] }
  0xdd   : > { %4296 = vmatprep.mubr.f32.mxu1 %v1296_v14  ;;  %v7361_v14 = vld [vmem:[#allocation20_spill] sm:$0xff]  ;;  %v7362_v3 = vld [vmem:[#allocation22_spill] sm:$0xff] }
  0xde   : > { %4140 = vmatmul.mubr.f32.gmra.mrb[2].mxu0 %v5838_v61  ;;  %v7369_v61 = vld [vmem:[#allocation28_spill] sm:$0xff]  ;;  %v3569_v6 = vld [vmem:[%s7245_s2 + $0x308] sm:$0xff] }
  0xdf   : > { %4142 = vmatprep.mubr.f32.mxu0 %v5870_v60  ;;  %4799 = vmatpush3.bf16.msra.mxu0 %v4796_v23  ;;  %v3591_v23 = vld [vmem:[%s7245_s2 + $0x3b8] sm:$0xff] }
  0xe0   : > { %4297 = vmatmul.mubr.f32.vlgmr.msra.gmra.mrb[0].mxu1 %v1298_v54  ;;  %4801 = vmatprep.subr.bf16.mxu0 %v4800_v7 }
  0xe1   : > { %4859 = vmatpush3.bf16.msra.mxu1 %v6112_v58  ;;  %4299 = vmatprep.mubr.f32.mxu1 %v5861_v30  ;;  %v3590_v58 = vld [vmem:[%s7245_s2 + $0x3b0] sm:$0xff]  ;;  %v7368_v30 = vld [vmem:[#allocation29_spill] sm:$0xff] }
  0xe2   : > { %4143 = vmatmul.mubr.f32.gmra.mrb[4].mxu0 %v5847_v57  ;;  %4861 = vmatprep.subr.bf16.mxu1 %v4860_v22  ;;  %v4868_v54 = vpack.c.bf16 %v3591_v23, %v3590_v58  ;;  %v7363_v58 = vld [vmem:[#allocation23_spill] sm:$0xff] }
  0xe3   : > { %4145 = vmatprep.mubr.f32.mxu0 %v5875_v9  ;;  %4803 = vmatpush3.bf16.msra.mxu0 %v4800_v7  ;;  %v3592_v7 = vld [vmem:[%s7245_s2 + $0x3c0] sm:$0xff]  ;;  %v3566_v23 = vld [vmem:[%s7245_s2 + $0x2f0] sm:$0xff] }
  0xe4   : > { %4300 = vmatmul.mubr.f32.gmra.mrb[2].mxu1 %v5886_v33  ;;  %4805 = vmatprep.subr.bf16.mxu0 %v4804_v2  ;;  %v4872_v50 = vpack.c.bf16 %v3593_v25, %v3592_v7  ;;  %v3596_v25 = vld [vmem:[%s7245_s2 + $0x3e0] sm:$0xff]  ;;  %v7367_v33 = vld [vmem:[#allocation27_spill] sm:$0xff] }
  0xe5   : > { %4302 = vmatprep.mubr.f32.mxu1 %v7361_v14  ;;  %4863 = vmatpush3.bf16.msra.mxu1 %v4860_v22  ;;  %v3564_v22 = vld [vmem:[%s7245_s2 + $0x2e0] sm:$0xff] }
  0xe6   : > { %4146 = vmatmul.mubr.f32.gmra.mrb[6].mxu0 %v5880_v26  ;;  %4865 = vmatprep.subr.bf16.mxu1 %v4864_v28 }
  0xe7   : > { %4148 = vmatprep.mubr.f32.mxu0 %v5900_v42  ;;  %4807 = vmatpush3.bf16.msra.mxu0 %v4804_v2  ;;  %v3594_v2 = vld [vmem:[%s7245_s2 + $0x3d0] sm:$0xff] }
  0xe8   : > { %4303 = vmatmul.mubr.f32.gmra.mrb[4].mxu1 %v5896_v1  ;;  %4809 = vmatprep.subr.bf16.mxu0 %v4808_v29  ;;  %v4876_v7 = vpack.c.bf16 %v3595_v18, %v3594_v2  ;;  %v7366_v2 = vld [vmem:[#allocation26_spill] sm:$0xff] }
  0xe9   : > { %4305 = vmatprep.mubr.f32.mxu1 %v5915_v45  ;;  %4867 = vmatpush3.bf16.msra.mxu1 %v4864_v28  ;;  %v4816_v28 = vpack.c.bf16 %v3565_v63, %v3564_v22  ;;  %v4820_v22 = vpack.c.bf16 %v3567_v35, %v3566_v23  ;;  %v3536_v63 = vld [vmem:[%s7245_s2 + $0x200] sm:$0xff]  ;;  %v3598_v23 = vld [vmem:[%s7245_s2 + $0x3f0] sm:$0xff] }
  0xea   : > { %4149 = vmatmul.mubr.f32.gmra.mrb[8].mxu0 %v7362_v3  ;;  %4869 = vmatprep.subr.bf16.mxu1 %v4868_v54 }
  0xeb   : > { %4151 = vmatprep.mubr.f32.mxu0 %v5936_v51  ;;  %4811 = vmatpush3.bf16.msra.mxu0 %v4808_v29  ;;  %v7365_v29 = vld [vmem:[#allocation25_spill] sm:$0xff] }
  0xec   : > { %4306 = vmatmul.mubr.f32.gmra.mrb[6].mxu1 %v5932_v20  ;;  %4813 = vmatprep.subr.bf16.mxu0 %v4812_v27 }
  0xed   : > { %4308 = vmatprep.mubr.f32.mxu1 %v7363_v58  ;;  %4871 = vmatpush3.bf16.msra.mxu1 %v4868_v54  ;;  %v3597_v54 = vld [vmem:[%s7245_s2 + $0x3e8] sm:$0xff] }
  0xee   : > { %4152 = vmatmul.mubr.f32.gmra.mrb[10].mxu0 %v7364_v47  ;;  %4873 = vmatprep.subr.bf16.mxu1 %v4872_v50  ;;  %v4880_v18 = vpack.c.bf16 %v3597_v54, %v3596_v25  ;;  %v3568_v54 = vld [vmem:[%s7245_s2 + $0x300] sm:$0xff] }
  0xef   : > { %4154 = vmatprep.mubr.f32.mxu0 %v7365_v29  ;;  %4815 = vmatpush3.bf16.msra.mxu0 %v4812_v27  ;;  %v3537_v27 = vld [vmem:[%s7245_s2 + $0x208] sm:$0xff] }
  0xf0   : > { %4309 = vmatmul.mubr.f32.gmra.mrb[8].mxu1 %v5985_v8  ;;  %4817 = vmatprep.subr.bf16.mxu0 %v4816_v28  ;;  %v4824_v35 = vpack.c.bf16 %v3537_v27, %v3536_v63  ;;  %v7373_v63 = vld [vmem:[#allocation7_spill] sm:$0xff]  ;;  %v7374_v27 = vld [vmem:[#allocation8_spill] sm:$0xff] }
  0xf1   : > { %4311 = vmatprep.mubr.f32.mxu1 %v5990_v37  ;;  %4875 = vmatpush3.bf16.msra.mxu1 %v4872_v50  ;;  %v3599_v50 = vld [vmem:[%s7245_s2 + $0x3f8] sm:$0xff] }
  0xf2   : > { %4155 = vmatmul.mubr.f32.gmra.mrb[12].mxu0 %v7366_v2  ;;  %4877 = vmatprep.subr.bf16.mxu1 %v4876_v7  ;;  %v4884_v25 = vpack.c.bf16 %v3599_v50, %v3598_v23  ;;  %v7376_v23 = vld [vmem:[#allocation32_spill] sm:$0xff]  ;;  %v7377_v50 = vld [vmem:[#allocation9_spill] sm:$0xff] }
  0xf3   : > { %4157 = vmatprep.mubr.f32.mxu0 %v7367_v33  ;;  %4819 = vmatpush3.bf16.msra.mxu0 %v4816_v28  ;;  %v7370_v28 = vld [vmem:[#allocation30_spill] sm:$0xff] }
  0xf4   : > { %4312 = vmatmul.mubr.f32.gmra.mrb[10].mxu1 %v6011_v53  ;;  %4821 = vmatprep.subr.bf16.mxu0 %v4820_v22 }
  0xf5   : > { %4314 = vmatprep.mubr.f32.mxu1 %v7368_v30  ;;  %4879 = vmatpush3.bf16.msra.mxu1 %v4876_v7  ;;  %v4888_v7 = vpack.c.bf16 %v3569_v6, %v3568_v54  ;;  %v7371_v6 = vld [vmem:[#allocation5_spill] sm:$0xff]  ;;  %v3539_v54 = vld [vmem:[%s7245_s2 + $0x218] sm:$0xff] }
  0xf6   : > { %4158 = vmatmul.mubr.f32.gmra.mrb[14].mxu0 %v7369_v61  ;;  %4881 = vmatprep.subr.bf16.mxu1 %v4880_v18 }
  0xf7   : > { %4160 = vmatprep.mubr.f32.mxu0 %v7370_v28  ;;  %4823 = vmatpush3.bf16.msra.mxu0 %v4820_v22  ;;  %v7372_v22 = vld [vmem:[#allocation6_spill] sm:$0xff] }
  0xf8   : > { %4315 = vmatmul.mubr.f32.gmra.mrb[12].mxu1 %v6045_v13  ;;  %4825 = vmatprep.subr.bf16.mxu0 %v4824_v35 }
  0xf9   : > { %4317 = vmatprep.mubr.f32.mxu1 %v6064_v32  ;;  %4883 = vmatpush3.bf16.msra.mxu1 %v4880_v18  ;;  %v7375_v18 = vld [vmem:[#allocation31_spill] sm:$0xff] }
  0xfa   : > { %4161 = vmatmul.mubr.f32.gmra.mrb[16].mxu0 %v6041_v31  ;;  %4885 = vmatprep.subr.bf16.mxu1 %v4884_v25 }
  0xfb   : > { %4163 = vmatprep.mubr.f32.mxu0 %v6074_v12 }
  0xfc   : > { %4318 = vmatmul.mubr.f32.gmra.mrb[14].mxu1 %v6080_v36 }
  0xfd   : > { %4320 = vmatprep.mubr.f32.mxu1 %v6094_v49  ;;  %4887 = vmatpush3.bf16.msra.mxu1 %v4884_v25  ;;  %v3538_v25 = vld [vmem:[%s7245_s2 + $0x210] sm:$0xff] }
  0xfe   : > { %4164 = vmatmul.mubr.f32.gmra.mrb[18].mxu0 %v6084_v10  ;;  %4889 = vmatprep.subr.bf16.mxu1 %v4888_v7  ;;  %v4828_v40 = vpack.c.bf16 %v3539_v54, %v3538_v25  ;;  %v3571_v25 = vld [vmem:[%s7245_s2 + $0x318] sm:$0xff]  ;;  %v4832_v54 = vpack.c.bf16 %v3541_v34, %v3540_v59  ;;  %v3573_v34 = vld [vmem:[%s7245_s2 + $0x328] sm:$0xff] }
  0xff   : > { %4166 = vmatprep.mubr.f32.mxu0 %v6098_v16 }
 0x100   : > { %4321 = vmatmul.mubr.f32.gmra.mrb[16].mxu1 %v6109_v41 }
 0x101   : > { %4323 = vmatprep.mubr.f32.mxu1 %v6127_v19 }
 0x102   : > { %4167 = vmatmul.mubr.f32.gmra.mrb[20].mxu0 %v6105_v24 }
 0x103   : > { %4169 = vmatprep.mubr.f32.mxu0 %v6136_v11 }
 0x104   : > { %4324 = vmatmul.mubr.f32.gmra.mrb[18].mxu1 %v6142_v38 }
 0x105   : > { %4326 = vmatprep.mubr.f32.mxu1 %v6151_v4 }
 0x106   : > { %4170 = vmatmul.mubr.f32.gmra.mrb[22].mxu0 %v6146_v48 }
 0x107   : > { %4172 = vmatprep.mubr.f32.mxu0 %v7371_v6 }
 0x108   : > { %4327 = vmatmul.mubr.f32.gmra.mrb[20].mxu1 %v7372_v22 }
 0x109   : > { %4329 = vmatprep.mubr.f32.mxu1 %v7373_v63 }
 0x10a   : > { %4173 = vmatmul.mubr.f32.gmra.mrb[24].mxu0 %v6159_v43 }
 0x10b   : > { %4175 = vmatprep.mubr.f32.mxu0 %v7374_v27 }
 0x10c   : > { %4330 = vmatmul.mubr.f32.gmra.mrb[22].mxu1 %v7375_v18 }
 0x10d   : > { %4332 = vmatprep.mubr.f32.mxu1 %v7376_v23 }
 0x10e   : > { %4176 = vmatmul.mubr.f32.gmra.mrb[26].mxu0 %v6195_v44 }
 0x10f   : > { %4178 = vmatprep.mubr.f32.mxu0 %v6200_v52 }
 0x110   : > { %4333 = vmatmul.mubr.f32.gmra.mrb[24].mxu1 %v7377_v50 }
 0x111   : > { %4335 = vmatprep.mubr.f32.mxu1 %v6219_v46 }
 0x112   : > { %4179 = vmatmul.mubr.f32.gmra.mrb[28].mxu0 %v6207_v0 }
 0x113   : > { %4181 = vmatprep.mubr.f32.mxu0 %v6226_v21 }
 0x114   : > { %4336 = vmatmul.mubr.f32.gmra.mrb[26].mxu1 %v6230_v55 }
 0x115   : > { %4338 = vmatprep.mubr.f32.mxu1 %v6241_v62 }
 0x116   : > { %4182 = vmatmul.mubr.f32.gmra.mrb[30].mxu0 %v6234_v17 }
 0x117   : > { %4376 = vmatprep.mubr.f32.mxu0 %v5870_v60  ;;  %v3570_v60 = vld [vmem:[%s7245_s2 + $0x310] sm:$0xff] }
 0x118   : > { %4339 = vmatmul.mubr.f32.gmra.mrb[28].mxu1 %v6256_v5 }
 0x119   : > { %4341 = vmatprep.mubr.f32.mxu1 %v6262_v15  ;;  %v4892_v15 = vpack.c.bf16 %v3571_v25, %v3570_v60  ;;  %v3544_v60 = vld [vmem:[%s7245_s2 + $0x240] sm:$0xff]  ;;  %v3545_v25 = vld [vmem:[%s7245_s2 + $0x248] sm:$0xff] }
 0x11a   : > { %4377 = vmatmul.mubr.f32.vlgmr.msra.gmra.mrb[32].mxu0 %v5847_v57  ;;  %v3542_v57 = vld [vmem:[%s7245_s2 + $0x230] sm:$0xff] }
 0x11b   : > { %4379 = vmatprep.mubr.f32.mxu0 %v5875_v9  ;;  %4827 = vmatpush3.bf16.msra.mxu0 %v4824_v35  ;;  %v3543_v9 = vld [vmem:[%s7245_s2 + $0x238] sm:$0xff]  ;;  %v3572_v35 = vld [vmem:[%s7245_s2 + $0x320] sm:$0xff] }
 0x11c   : > { %4342 = vmatmul.mubr.f32.gmra.mrb[30].mxu1 %v6272_v39  ;;  %4829 = vmatprep.subr.bf16.mxu0 %v4828_v40  ;;  %v4836_v59 = vpack.c.bf16 %v3543_v9, %v3542_v57  ;;  %v3574_v57 = vld [vmem:[%s7245_s2 + $0x330] sm:$0xff]  ;;  %v3575_v9 = vld [vmem:[%s7245_s2 + $0x338] sm:$0xff] }
 0x11d   : > { %4536 = vmatprep.mubr.f32.mxu1 %v7361_v14 }
 0x11e   : > { %4380 = vmatmul.mubr.f32.gmra.mrb[34].mxu0 %v5880_v26 }
 0x11f   : > { %4382 = vmatprep.mubr.f32.mxu0 %v5900_v42  ;;  %4831 = vmatpush3.bf16.msra.mxu0 %v4828_v40  ;;  %v4896_v42 = vpack.c.bf16 %v3573_v34, %v3572_v35  ;;  %v4840_v40 = vpack.c.bf16 %v3545_v25, %v3544_v60  ;;  %v3547_v35 = vld [vmem:[%s7245_s2 + $0x258] sm:$0xff]  ;;  %v4900_v34 = vpack.c.bf16 %v3575_v9, %v3574_v57  ;;  %v3548_v25 = vld [vmem:[%s7245_s2 + $0x260] sm:$0xff]  ;;  %v3549_v57 = vld [vmem:[%s7245_s2 + $0x268] sm:$0xff] }
 0x120   : > { %4537 = vmatmul.mubr.f32.vlgmr.msra.gmra.mrb[32].mxu1 %v5896_v1  ;;  %4833 = vmatprep.subr.bf16.mxu0 %v4832_v54 }
 0x121   : > { %4891 = vmatpush3.bf16.msra.mxu1 %v4888_v7  ;;  %4539 = vmatprep.mubr.f32.mxu1 %v5915_v45  ;;  %v3546_v7 = vld [vmem:[%s7245_s2 + $0x250] sm:$0xff] }
 0x122   : > { %4383 = vmatmul.mubr.f32.gmra.mrb[36].mxu0 %v7362_v3  ;;  %4893 = vmatprep.subr.bf16.mxu1 %v4892_v15  ;;  %v4844_v60 = vpack.c.bf16 %v3547_v35, %v3546_v7  ;;  %v4848_v7 = vpack.c.bf16 %v3549_v57, %v3548_v25  ;;  %v3550_v35 = vld [vmem:[%s7245_s2 + $0x270] sm:$0xff] }
 0x123   : > { %4385 = vmatprep.mubr.f32.mxu0 %v5936_v51  ;;  %4835 = vmatpush3.bf16.msra.mxu0 %v4832_v54  ;;  %v3576_v54 = vld [vmem:[%s7245_s2 + $0x340] sm:$0xff] }
 0x124   : > { %4540 = vmatmul.mubr.f32.gmra.mrb[34].mxu1 %v5932_v20  ;;  %4837 = vmatprep.subr.bf16.mxu0 %v4836_v59 }
 0x125   : > { %4542 = vmatprep.mubr.f32.mxu1 %v7363_v58  ;;  %4895 = vmatpush3.bf16.msra.mxu1 %v4892_v15  ;;  %v3577_v15 = vld [vmem:[%s7245_s2 + $0x348] sm:$0xff] }
 0x126   : > { %4386 = vmatmul.mubr.f32.gmra.mrb[38].mxu0 %v7364_v47  ;;  %4897 = vmatprep.subr.bf16.mxu1 %v4896_v42  ;;  %v4904_v9 = vpack.c.bf16 %v3577_v15, %v3576_v54  ;;  %v3551_v54 = vld [vmem:[%s7245_s2 + $0x278] sm:$0xff] }
 0x127   : > { %4388 = vmatprep.mubr.f32.mxu0 %v7365_v29  ;;  %4839 = vmatpush3.bf16.msra.mxu0 %v4836_v59  ;;  %v3578_v59 = vld [vmem:[%s7245_s2 + $0x350] sm:$0xff]  ;;  %v4852_v25 = vpack.c.bf16 %v3551_v54, %v3550_v35  ;;  %v687_v54 = vpop.permute.xlu1 %686 }
 0x128   : > { %4543 = vmatmul.mubr.f32.gmra.mrb[36].mxu1 %v5985_v8  ;;  %4841 = vmatprep.subr.bf16.mxu0 %v4840_v40 }
 0x129   : > { %4545 = vmatprep.mubr.f32.mxu1 %v5990_v37  ;;  %4899 = vmatpush3.bf16.msra.mxu1 %v4896_v42  ;;  %v3579_v42 = vld [vmem:[%s7245_s2 + $0x358] sm:$0xff] }
 0x12a   : > { %4389 = vmatmul.mubr.f32.gmra.mrb[40].mxu0 %v7366_v2  ;;  %4901 = vmatprep.subr.bf16.mxu1 %v4900_v34  ;;  %v4908_v15 = vpack.c.bf16 %v3579_v42, %v3578_v59  ;;  %v3583_v59 = vld [vmem:[%s7245_s2 + $0x378] sm:$0xff]  ;;  %v5236_v42 = vpop.permute.xlu0 %5235 }
 0x12b   : > { %4391 = vmatprep.mubr.f32.mxu0 %v7367_v33  ;;  %4843 = vmatpush3.bf16.msra.mxu0 %v4840_v40  ;;  %v3580_v40 = vld [vmem:[%s7245_s2 + $0x360] sm:$0xff]  ;;  %v5238_v35 = vunpack.i.h.bf16 %v5236_v42 }
 0x12c   : > { %4546 = vmatmul.mubr.f32.gmra.mrb[38].mxu1 %v6011_v53  ;;  %4845 = vmatprep.subr.bf16.mxu0 %v4844_v60 }
 0x12d   : > { %4548 = vmatprep.mubr.f32.mxu1 %v7368_v30  ;;  %4903 = vmatpush3.bf16.msra.mxu1 %v4900_v34  ;;  %v3581_v34 = vld [vmem:[%s7245_s2 + $0x368] sm:$0xff] }
 0x12e   : > { %4392 = vmatmul.mubr.f32.gmra.mrb[42].mxu0 %v7369_v61  ;;  %4905 = vmatprep.subr.bf16.mxu1 %v4904_v9  ;;  %v4912_v57 = vpack.c.bf16 %v3581_v34, %v3580_v40  ;;  %v7378_v34 = vld [vmem:[#allocation34_spill] sm:$0xff] }
 0x12f   : > { %4394 = vmatprep.mubr.f32.mxu0 %v7370_v28  ;;  %4847 = vmatpush3.bf16.msra.mxu0 %v4844_v60  ;;  %v3582_v60 = vld [vmem:[%s7245_s2 + $0x370] sm:$0xff] }
 0x130   : > { %4549 = vmatmul.mubr.f32.gmra.mrb[40].mxu1 %v6045_v13  ;;  %4849 = vmatprep.subr.bf16.mxu0 %v4848_v7 }
 0x131   : > { %4551 = vmatprep.mubr.f32.mxu1 %v6064_v32  ;;  %4907 = vmatpush3.bf16.msra.mxu1 %v4904_v9  ;;  %v4916_v9 = vpack.c.bf16 %v3583_v59, %v3582_v60  ;;  %v7379_v60 = vld [vmem:[#allocation12_spill] sm:$0xff] }
 0x132   : > { %4395 = vmatmul.mubr.f32.gmra.mrb[44].mxu0 %v6041_v31  ;;  %4909 = vmatprep.subr.bf16.mxu1 %v4908_v15 }
 0x133   : > { %4397 = vmatprep.mubr.f32.mxu0 %v6074_v12  ;;  %4851 = vmatpush3.bf16.msra.mxu0 %v4848_v7  ;;  %v5237_v7 = vunpack.i.l.bf16 %v5236_v42 }
 0x134   : > { %4552 = vmatmul.mubr.f32.gmra.mrb[42].mxu1 %v6080_v36  ;;  %4853 = vmatprep.subr.bf16.mxu0 %v4852_v25 }
 0x135   : > { %4554 = vmatprep.mubr.f32.mxu1 %v6094_v49  ;;  %4911 = vmatpush3.bf16.msra.mxu1 %v4908_v15  ;;  %v5239_v15 = vld [vmem:[%s5737_s5 + $0x18] sm:$0xff] }
 0x136   : > { %4398 = vmatmul.mubr.f32.gmra.mrb[46].mxu0 %v6084_v10  ;;  %4913 = vmatprep.subr.bf16.mxu1 %v4912_v57  ;;  %v650_v40 = vsel %vm615_vm1, %v5239_v15, %v5237_v7  ;;  %v7381_v15 = vld [vmem:[#allocation13_spill] sm:$0xff] }
 0x137   : > { %4400 = vmatprep.mubr.f32.mxu0 %v6098_v16  ;;  %4855 = vmatpush3.bf16.msra.mxu0 %v4852_v25  ;;  %v5240_v25 = vld [vmem:[%s5737_s5 + $0x20] sm:$0xff]  ;;  %v2643_v59 = vrot.slane %v650_v40, 1 }
 0x138   : > { %4555 = vmatmul.mubr.f32.gmra.mrb[44].mxu1 %v6109_v41 }
 0x139   : > { %4557 = vmatprep.mubr.f32.mxu1 %v6127_v19  ;;  %4915 = vmatpush3.bf16.msra.mxu1 %v4912_v57  ;;  %v651_v57 = vsel %vm615_vm1, %v5240_v25, %v5238_v35  ;;  %v7383_v25 = vld [vmem:[#allocation14_spill] sm:$0xff] }
 0x13a   : > { %4401 = vmatmul.mubr.f32.gmra.mrb[48].mxu0 %v6105_v24  ;;  %4917 = vmatprep.subr.bf16.mxu1 %v4916_v9 }
 0x13b   : > { %4403 = vmatprep.mubr.f32.mxu0 %v6136_v11 }
 0x13c   : > { %4558 = vmatmul.mubr.f32.gmra.mrb[46].mxu1 %v6142_v38 }
 0x13d   : > { %4560 = vmatprep.mubr.f32.mxu1 %v6151_v4  ;;  %4919 = vmatpush3.bf16.msra.mxu1 %v4916_v9  ;;  %v5241_v9 = vld [vmem:[%s5737_s5 + $0x28] sm:$0x3] }
 0x13e   : > { %4404 = vmatmul.mubr.f32.gmra.mrb[50].mxu0 %v6146_v48  ;;  %v723_v42 = vsel %vm615_vm1, %v5241_v9, %v687_v54  ;;  %v7384_v54 = vld [vmem:[#allocation17_spill] sm:$0xff]  ;;  %v7386_v9 = vld [vmem:[#allocation15_spill] sm:$0xff] }
 0x13f   : > { %4406 = vmatprep.mubr.f32.mxu0 %v7371_v6 }
 0x140   : > { %4561 = vmatmul.mubr.f32.gmra.mrb[48].mxu1 %v7372_v22 }
 0x141   : > { %4563 = vmatprep.mubr.f32.mxu1 %v7373_v63 }
 0x142   : > { %4407 = vmatmul.mubr.f32.gmra.mrb[52].mxu0 %v6159_v43 }
 0x143   : > { %4409 = vmatprep.mubr.f32.mxu0 %v7374_v27 }
 0x144   : > { %4564 = vmatmul.mubr.f32.gmra.mrb[50].mxu1 %v7375_v18 }
 0x145   : > { %4566 = vmatprep.mubr.f32.mxu1 %v7376_v23 }
 0x146   : > { %4410 = vmatmul.mubr.f32.gmra.mrb[54].mxu0 %v6195_v44 }
 0x147   : > { %4412 = vmatprep.mubr.f32.mxu0 %v6200_v52 }
 0x148   : > { %4567 = vmatmul.mubr.f32.gmra.mrb[52].mxu1 %v7377_v50 }
 0x149   : > { %4569 = vmatprep.mubr.f32.mxu1 %v6219_v46 }
 0x14a   : > { %4413 = vmatmul.mubr.f32.gmra.mrb[56].mxu0 %v6207_v0 }
 0x14b   : > { %4415 = vmatprep.mubr.f32.mxu0 %v6226_v21 }
 0x14c   : > { %4570 = vmatmul.mubr.f32.gmra.mrb[54].mxu1 %v6230_v55 }
 0x14d   : > { %4572 = vmatprep.mubr.f32.mxu1 %v6241_v62 }
 0x14e   : > { %4416 = vmatmul.mubr.f32.gmra.mrb[58].mxu0 %v6234_v17  ;;  %v2644_v17 = vrot.slane %v651_v57, 1 }
 0x14f   : > { %4418 = vmatprep.mubr.f32.mxu0 %v6247_v56  ;;  %v7380_v56 = vld [vmem:[#allocation35_spill] sm:$0xff] }
 0x150   : > { %4573 = vmatmul.mubr.f32.gmra.mrb[56].mxu1 %v6256_v5  ;;  %v2646_v5 = vrot.slane %v723_v42, 1  ;;  %v2645_v7 = vsel %vm416_vm0, %v2643_v59, %v2644_v17  ;;  %v7387_v42 = vld [vmem:[#allocation18_spill] sm:$0xff]  ;;  %v7389_v59 = vld [vmem:[#allocation21_spill] sm:$0xff] }
 0x151   : > { %4575 = vmatprep.mubr.f32.mxu1 %v7378_v34  ;;  %v7382_v34 = vld [vmem:[#allocation36_spill] sm:$0xff] }
 0x152   : > { %4419 = vmatmul.mubr.f32.gmra.mrb[60].mxu0 %v7379_v60  ;;  %v2647_v35 = vsel %vm416_vm0, %v2644_v17, %v2646_v5 }
 0x153   : > { %4421 = vmatprep.mubr.f32.mxu0 %v650_v40  ;;  %v7385_v40 = vld [vmem:[#allocation16_spill] sm:$0xff] }
 0x154   : > { %4576 = vmatmul.mubr.f32.gmra.mrb[58].mxu1 %v6272_v39 }
 0x155   : > { %4578 = vmatprep.mubr.f32.mxu1 %v7380_v56 }
 0x156   : > { %4422 = vmatmul.mubr.f32.gmra.mrb[62].mxu0 %v651_v57  ;;  %v7388_v57 = vld [vmem:[#allocation19_spill] sm:$0xff] }
 0x157   : > { %4456 = vmatprep.mubr.f32.mxu0 %v7381_v15 }
 0x158   : > { %4579 = vmatmul.mubr.f32.gmra.mrb[60].mxu1 %v7382_v34 }
 0x159   : > { %4581 = vmatprep.mubr.f32.mxu1 %v2645_v7 }
 0x15a   : > { %4457 = vmatmul.mubr.f32.vlgmr.msra.gmra.mrb[32].mxu0 %v7383_v25 }
 0x15b   : > { %4459 = vmatprep.mubr.f32.mxu0 %v7384_v54 }
 0x15c   : > { %4582 = vmatmul.mubr.f32.gmra.mrb[62].mxu1 %v2647_v35 }
 0x15d   : > { %4616 = vmatprep.mubr.f32.mxu1 %v7385_v40 }
 0x15e   : > { %4460 = vmatmul.mubr.f32.gmra.mrb[34].mxu0 %v7386_v9 }
 0x15f   : > { %4462 = vmatprep.mubr.f32.mxu0 %v7387_v42 }
 0x160   : > { %4617 = vmatmul.mubr.f32.vlgmr.msra.gmra.mrb[32].mxu1 %v7388_v57 }
 0x161   : > { %4619 = vmatprep.mubr.f32.mxu1 %v7361_v14 }
 0x162   : > { %4463 = vmatmul.mubr.f32.gmra.mrb[36].mxu0 %v5880_v26  ;;  %v7392_v26 = vld [vmem:[#allocation33_spill] sm:$0xff] }
 0x163   : > { %4465 = vmatprep.mubr.f32.mxu0 %v7389_v59 }
 0x164   : > { %4620 = vmatmul.mubr.f32.gmra.mrb[34].mxu1 %v5896_v1 }
 0x165   : > { %4622 = vmatprep.mubr.f32.mxu1 %v5915_v45 }
 0x166   : > { %4466 = vmatmul.mubr.f32.gmra.mrb[38].mxu0 %v7362_v3 }
 0x167   : > { %4468 = vmatprep.mubr.f32.mxu0 %v5936_v51 }
 0x168   : > { %4623 = vmatmul.mubr.f32.gmra.mrb[36].mxu1 %v5932_v20 }
 0x169   : > { %4625 = vmatprep.mubr.f32.mxu1 %v7363_v58 }
 0x16a   : > { %4469 = vmatmul.mubr.f32.gmra.mrb[40].mxu0 %v7364_v47 }
 0x16b   : > { %4471 = vmatprep.mubr.f32.mxu0 %v7365_v29 }
 0x16c   : > { %4626 = vmatmul.mubr.f32.gmra.mrb[38].mxu1 %v5985_v8 }
 0x16d   : > { %4628 = vmatprep.mubr.f32.mxu1 %v5990_v37 }
 0x16e   : > { %4472 = vmatmul.mubr.f32.gmra.mrb[42].mxu0 %v7366_v2 }
 0x16f   : > { %4474 = vmatprep.mubr.f32.mxu0 %v7367_v33  ;;  %v7393_v33 = vld [vmem:[#allocation34_spill] sm:$0xff] }
 0x170   : > { %4629 = vmatmul.mubr.f32.gmra.mrb[40].mxu1 %v6011_v53  ;;  %v6675_v53 = vld [vmem:[%s7246_s3] ss:$0 sm:$0xff] }
 0x171   : > { %4631 = vmatprep.mubr.f32.mxu1 %v7368_v30  ;;  %v7391_v30 = vld [vmem:[#allocation11_spill] sm:$0xff] }
 0x172   : > { %4475 = vmatmul.mubr.f32.gmra.mrb[44].mxu0 %v7369_v61  ;;  %v7390_v61 = vld [vmem:[#allocation10_spill] sm:$0xff] }
 0x173   : > { %4477 = vmatprep.mubr.f32.mxu0 %v7370_v28 }
 0x174   : > { %4632 = vmatmul.mubr.f32.gmra.mrb[42].mxu1 %v6045_v13 }
 0x175   : > { %4634 = vmatprep.mubr.f32.mxu1 %v6064_v32 }
 0x176   : > { %4478 = vmatmul.mubr.f32.gmra.mrb[46].mxu0 %v6041_v31 }
 0x177   : > { %4480 = vmatprep.mubr.f32.mxu0 %v6074_v12 }
 0x178   : > { %4635 = vmatmul.mubr.f32.gmra.mrb[44].mxu1 %v6080_v36 }
 0x179   : > { %4637 = vmatprep.mubr.f32.mxu1 %v6094_v49 }
 0x17a   : > { %4481 = vmatmul.mubr.f32.gmra.mrb[48].mxu0 %v6084_v10 }
 0x17b   : > { %4483 = vmatprep.mubr.f32.mxu0 %v6098_v16 }
 0x17c   : > { %4638 = vmatmul.mubr.f32.gmra.mrb[46].mxu1 %v6109_v41 }
 0x17d   : > { %4640 = vmatprep.mubr.f32.mxu1 %v6127_v19 }
 0x17e   : > { %4484 = vmatmul.mubr.f32.gmra.mrb[50].mxu0 %v6105_v24 }
 0x17f   : > { %4486 = vmatprep.mubr.f32.mxu0 %v6136_v11 }
 0x180   : > { %4641 = vmatmul.mubr.f32.gmra.mrb[48].mxu1 %v6142_v38 }
 0x181   : > { %4643 = vmatprep.mubr.f32.mxu1 %v6151_v4 }
 0x182   : > { %4487 = vmatmul.mubr.f32.gmra.mrb[52].mxu0 %v6146_v48 }
 0x183   : > { %4489 = vmatprep.mubr.f32.mxu0 %v7371_v6 }
 0x184   : > { %4644 = vmatmul.mubr.f32.gmra.mrb[50].mxu1 %v7372_v22 }
 0x185   : > { %4646 = vmatprep.mubr.f32.mxu1 %v7373_v63 }
 0x186   : > { %4490 = vmatmul.mubr.f32.gmra.mrb[54].mxu0 %v6159_v43 }
 0x187   : > { %4492 = vmatprep.mubr.f32.mxu0 %v7374_v27 }
 0x188   : > { %4647 = vmatmul.mubr.f32.gmra.mrb[52].mxu1 %v7375_v18 }
 0x189   : > { %4649 = vmatprep.mubr.f32.mxu1 %v7376_v23 }
 0x18a   : > { %4493 = vmatmul.mubr.f32.gmra.mrb[56].mxu0 %v6195_v44 }
 0x18b   : > { %4495 = vmatprep.mubr.f32.mxu0 %v6200_v52 }
 0x18c   : > { %4650 = vmatmul.mubr.f32.gmra.mrb[54].mxu1 %v7377_v50 }
 0x18d   : > { %4652 = vmatprep.mubr.f32.mxu1 %v6219_v46 }
 0x18e   : > { %4496 = vmatmul.mubr.f32.gmra.mrb[58].mxu0 %v6207_v0 }
 0x18f   : > { %4498 = vmatprep.mubr.f32.mxu0 %v6226_v21 }
 0x190   : > { %4653 = vmatmul.mubr.f32.gmra.mrb[56].mxu1 %v6230_v55 }
 0x191   : > { %4655 = vmatprep.mubr.f32.mxu1 %v6241_v62 }
 0x192   : > { %4499 = vmatmul.mubr.f32.gmra.mrb[60].mxu0 %v7390_v61 }
 0x193   : > { %4501 = vmatprep.mubr.f32.mxu0 %v7391_v30 }
 0x194   : > { %4656 = vmatmul.mubr.f32.gmra.mrb[58].mxu1 %v7392_v26 }
 0x195   : > { %4658 = vmatprep.mubr.f32.mxu1 %v7393_v33 }
 0x196   : > { %4502 = vmatmul.mubr.f32.gmra.mrb[62].mxu0 %v7379_v60 }
 0x198   : > { %4659 = vmatmul.mubr.f32.gmra.mrb[60].mxu1 %v6272_v39 }
 0x199   : > { %4661 = vmatprep.mubr.f32.mxu1 %v7380_v56 }
 0x19c   : > { %4662 = vmatmul.mubr.f32.gmra.mrb[62].mxu1 %v7382_v34 }
 0x1ad   : > { %v6664_v20 = vpop.f32.mrb[0].mxu0 }
 0x1ae   : > { %v6666_v1 = vpop.f32.mrb[1].mxu0 }
 0x1b1   : > { %v6668_v45 = vpop.f32.mrb[2].mxu0 }
 0x1b2   : > { %v6670_v51 = vpop.f32.mrb[3].mxu0 }
 0x1b3   : > { %v4298_v8 = vpop.f32.mrb[0].mxu1 }
 0x1b4   : > { %v1901_v37 = vadd.f32 %v4298_v8, %v6675_v53  ;;  %v1741_v36 = vpop.f32.mrb[1].mxu1 }
 0x1b5   : > { %v1900_v31 = vadd.f32 %v6675_v53, %v1741_v36  ;;  %v6679_v13 = vpop.f32.mrb[4].mxu0 }
 0x1b6   : > { %1966 = vrot.lane.b32.xlu1 %v1901_v37, %s5322_s14  ;;  %v6682_v32 = vpop.f32.mrb[5].mxu0 }
 0x1b7   : > { %1964 = vrot.lane.b32.xlu0 %v1900_v31, %s5322_s14  ;;  %v4301_v12 = vpop.f32.mrb[2].mxu1 }
 0x1b8   : > { %v1903_v10 = vadd.f32 %v4301_v12, %v6675_v53  ;;  %v1751_v49 = vpop.f32.mrb[3].mxu1 }
 0x1b9   : > { %v1902_v16 = vadd.f32 %v6675_v53, %v1751_v49  ;;  %v6687_v24 = vpop.f32.mrb[6].mxu0 }
 0x1ba   : > { %1970 = vrot.lane.b32.xlu1 %v1903_v10, %s5322_s14  ;;  %v6690_v41 = vpop.f32.mrb[7].mxu0 }
 0x1bb   : > { %1968 = vrot.lane.b32.xlu0 %v1902_v16, %s5322_s14  ;;  %v4304_v19 = vpop.f32.mrb[4].mxu1 }
 0x1bc   : > { %v1905_v11 = vadd.f32 %v4304_v19, %v6675_v53  ;;  %v1761_v38 = vpop.f32.mrb[5].mxu1 }
 0x1bd   : > { %v1904_v48 = vadd.f32 %v6675_v53, %v1761_v38  ;;  %v6695_v4 = vpop.f32.mrb[8].mxu0 }
 0x1be   : > { %1974 = vrot.lane.b32.xlu1 %v1905_v11, %s5322_s14  ;;  %v6698_v43 = vpop.f32.mrb[9].mxu0 }
 0x1bf   : > { %1972 = vrot.lane.b32.xlu0 %v1904_v48, %s5322_s14  ;;  %v4307_v44 = vpop.f32.mrb[6].mxu1 }
 0x1c0   : > { %v1907_v52 = vadd.f32 %v4307_v44, %v6675_v53  ;;  %v1771_v0 = vpop.f32.mrb[7].mxu1 }
 0x1c1   : > { %v1906_v46 = vadd.f32 %v6675_v53, %v1771_v0  ;;  %v6703_v21 = vpop.f32.mrb[10].mxu0 }
 0x1c2   : > { %1978 = vrot.lane.b32.xlu1 %v1907_v52, %s5322_s14  ;;  %v6706_v55 = vpop.f32.mrb[11].mxu0 }
 0x1c3   : > { %1976 = vrot.lane.b32.xlu0 %v1906_v46, %s5322_s14  ;;  %v4310_v17 = vpop.f32.mrb[8].mxu1 }
 0x1c4   : > { %v1909_v62 = vadd.f32 %v4310_v17, %v6675_v53  ;;  %v1781_v56 = vpop.f32.mrb[9].mxu1 }
 0x1c5   : > { %v1908_v5 = vadd.f32 %v6675_v53, %v1781_v56  ;;  %v6711_v39 = vpop.f32.mrb[12].mxu0 }
 0x1c6   : > { %1982 = vrot.lane.b32.xlu1 %v1909_v62, %s5322_s14  ;;  %v6714_v14 = vpop.f32.mrb[13].mxu0 }
 0x1c7   : > { %1980 = vrot.lane.b32.xlu0 %v1908_v5, %s5322_s14  ;;  %v4313_v3 = vpop.f32.mrb[10].mxu1 }
 0x1c8   : > { %v1911_v58 = vadd.f32 %v4313_v3, %v6675_v53  ;;  %v1791_v47 = vpop.f32.mrb[11].mxu1 }
 0x1c9   : > { %v1910_v29 = vadd.f32 %v6675_v53, %v1791_v47  ;;  %v6719_v2 = vpop.f32.mrb[14].mxu0 }
 0x1ca   : > { %1986 = vrot.lane.b32.xlu1 %v1911_v58, %s5322_s14  ;;  %v6722_v28 = vpop.f32.mrb[15].mxu0 }
 0x1cb   : > { %1984 = vrot.lane.b32.xlu0 %v1910_v29, %s5322_s14  ;;  %v4316_v6 = vpop.f32.mrb[12].mxu1 }
 0x1cc   : > { %v1913_v22 = vadd.f32 %v4316_v6, %v6675_v53  ;;  %v1801_v63 = vpop.f32.mrb[13].mxu1 }
 0x1cd   : > { %v1912_v27 = vadd.f32 %v6675_v53, %v1801_v63  ;;  %v6727_v18 = vpop.f32.mrb[16].mxu0 }
 0x1ce   : > { %1990 = vrot.lane.b32.xlu1 %v1913_v22, %s5322_s14  ;;  %v6730_v23 = vpop.f32.mrb[17].mxu0 }
 0x1cf   : > { %1988 = vrot.lane.b32.xlu0 %v1912_v27, %s5322_s14  ;;  %v4319_v50 = vpop.f32.mrb[14].mxu1 }
 0x1d0   : > { %v1915_v34 = vadd.f32 %v4319_v50, %v6675_v53  ;;  %v1811_v60 = vpop.f32.mrb[15].mxu1 }
 0x1d1   : > { %v1914_v7 = vadd.f32 %v6675_v53, %v1811_v60  ;;  %v6735_v15 = vpop.f32.mrb[18].mxu0 }
 0x1d2   : > { %1994 = vrot.lane.b32.xlu1 %v1915_v34, %s5322_s14  ;;  %v6738_v35 = vpop.f32.mrb[19].mxu0 }
 0x1d3   : > { %1992 = vrot.lane.b32.xlu0 %v1914_v7, %s5322_s14  ;;  %v4322_v25 = vpop.f32.mrb[16].mxu1 }
 0x1d4   : > { %v1917_v54 = vadd.f32 %v4322_v25, %v6675_v53  ;;  %v1821_v40 = vpop.f32.mrb[17].mxu1 }
 0x1d5   : > { %v1916_v9 = vadd.f32 %v6675_v53, %v1821_v40  ;;  %v6743_v42 = vpop.f32.mrb[20].mxu0  ;;  %v1214_v40 = vadd.f32 %v6675_v53, %v6666_v1 }
 0x1d6   : > { %1998 = vrot.lane.b32.xlu1 %v1917_v54, %s5322_s14  ;;  %v6746_v57 = vpop.f32.mrb[21].mxu0  ;;  %v1215_v54 = vadd.f32 %v6664_v20, %v6675_v53  ;;  %v1216_v20 = vadd.f32 %v6675_v53, %v6670_v51 }
 0x1d7   : > { %1996 = vrot.lane.b32.xlu0 %v1916_v9, %s5322_s14  ;;  %v4325_v59 = vpop.f32.mrb[18].mxu1 }
 0x1d8   : > { %v1919_v61 = vadd.f32 %v4325_v59, %v6675_v53  ;;  %v1831_v30 = vpop.f32.mrb[19].mxu1 }
 0x1d9   : > { %v1918_v26 = vadd.f32 %v6675_v53, %v1831_v30  ;;  %v6751_v33 = vpop.f32.mrb[22].mxu0 }
 0x1da   : > { %2002 = vrot.lane.b32.xlu1 %v1919_v61, %s5322_s14  ;;  %v6754_v8 = vpop.f32.mrb[23].mxu0 }
 0x1db   : > { %2000 = vrot.lane.b32.xlu0 %v1918_v26, %s5322_s14  ;;  %v4328_v37 = vpop.f32.mrb[20].mxu1  ;;  %v1217_v26 = vadd.f32 %v6668_v45, %v6675_v53  ;;  %v1219_v45 = vadd.f32 %v6679_v13, %v6675_v53 }
 0x1dc   : > { %v1921_v36 = vadd.f32 %v4328_v37, %v6675_v53  ;;  %v1841_v31 = vpop.f32.mrb[21].mxu1 }
 0x1dd   : > { %v1920_v12 = vadd.f32 %v6675_v53, %v1841_v31  ;;  %v6759_v10 = vpop.f32.mrb[24].mxu0 }
 0x1de   : > { %2006 = vrot.lane.b32.xlu1 %v1921_v36, %s5322_s14  ;;  %v6762_v49 = vpop.f32.mrb[25].mxu0 }
 0x1df   : > { %2004 = vrot.lane.b32.xlu0 %v1920_v12, %s5322_s14  ;;  %v4331_v16 = vpop.f32.mrb[22].mxu1 }
 0x1e0   : > { %v1923_v19 = vadd.f32 %v4331_v16, %v6675_v53  ;;  %v1851_v11 = vpop.f32.mrb[23].mxu1 }
 0x1e1   : > { %v1922_v38 = vadd.f32 %v6675_v53, %v1851_v11  ;;  %v6767_v48 = vpop.f32.mrb[26].mxu0 }
 0x1e2   : > { %2010 = vrot.lane.b32.xlu1 %v1923_v19, %s5322_s14  ;;  %v6770_v44 = vpop.f32.mrb[27].mxu0  ;;  %v1218_v19 = vadd.f32 %v6675_v53, %v6682_v32  ;;  %v1220_v32 = vadd.f32 %v6675_v53, %v6690_v41  ;;  %v1223_v41 = vadd.f32 %v6695_v4, %v6675_v53 }
 0x1e3   : > { %2008 = vrot.lane.b32.xlu0 %v1922_v38, %s5322_s14  ;;  %v4334_v52 = vpop.f32.mrb[24].mxu1 }
 0x1e4   : > { %v1925_v0 = vadd.f32 %v4334_v52, %v6675_v53  ;;  %v1861_v46 = vpop.f32.mrb[25].mxu1 }
 0x1e5   : > { %v1924_v17 = vadd.f32 %v6675_v53, %v1861_v46  ;;  %v6775_v62 = vpop.f32.mrb[28].mxu0 }
 0x1e6   : > { %2014 = vrot.lane.b32.xlu1 %v1925_v0, %s5322_s14  ;;  %v6778_v56 = vpop.f32.mrb[29].mxu0 }
 0x1e7   : > { %2012 = vrot.lane.b32.xlu0 %v1924_v17, %s5322_s14  ;;  %v4337_v5 = vpop.f32.mrb[26].mxu1  ;;  %v1221_v17 = vadd.f32 %v6687_v24, %v6675_v53 }
 0x1e8   : > { %v1927_v3 = vadd.f32 %v4337_v5, %v6675_v53  ;;  %v1871_v58 = vpop.f32.mrb[27].mxu1 }
 0x1e9   : > { %v1926_v47 = vadd.f32 %v6675_v53, %v1871_v58  ;;  %v6783_v29 = vpop.f32.mrb[30].mxu0 }
 0x1ea   : > { %2018 = vrot.lane.b32.xlu1 %v1927_v3, %s5322_s14  ;;  %v6786_v6 = vpop.f32.mrb[31].mxu0 }
 0x1eb   : > { %2016 = vrot.lane.b32.xlu0 %v1926_v47, %s5322_s14  ;;  %v4340_v22 = vpop.f32.mrb[28].mxu1 }
 0x1ec   : > { %v1929_v63 = vadd.f32 %v4340_v22, %v6675_v53  ;;  %v1881_v27 = vpop.f32.mrb[29].mxu1 }
 0x1ed   : > { %v1928_v50 = vadd.f32 %v6675_v53, %v1881_v27 }
 0x1ee   : > { %2022 = vrot.lane.b32.xlu1 %v1929_v63, %s5322_s14 }
 0x1ef   : > { %2020 = vrot.lane.b32.xlu0 %v1928_v50, %s5322_s14  ;;  %v4343_v34 = vpop.f32.mrb[30].mxu1 }
 0x1f0   : > { %v1931_v60 = vadd.f32 %v4343_v34, %v6675_v53  ;;  %v1891_v7 = vpop.f32.mrb[31].mxu1 }
 0x1f1   : > { %v1930_v25 = vadd.f32 %v6675_v53, %v1891_v7 }
 0x1f2   : > { %2026 = vrot.lane.b32.xlu1 %v1931_v60, %s5322_s14  ;;  %v1222_v60 = vadd.f32 %v6675_v53, %v6698_v43  ;;  %v1225_v43 = vadd.f32 %v6703_v21, %v6675_v53 }
 0x1f3   : > { %2024 = vrot.lane.b32.xlu0 %v1930_v25, %s5322_s14 }
 0x228   : > { %v1967_v9 = vpop.permute.xlu1 %1966 }
 0x229   : > { %v2061_v59 = vsel %vm615_vm1, %v1215_v54, %v1967_v9  ;;  %v1965_v61 = vpop.permute.xlu0 %1964 }
 0x22a   : > { %2093 = vst [vmem:[%s6805_s30 + $0x8] sm:$0xff] %v2061_v59  ;;  %v2060_v30 = vsel %vm615_vm1, %v1214_v40, %v1965_v61 }
 0x22b   : > { %2092 = vst [vmem:[%s6805_s30] sm:$0xff] %v2060_v30 }
 0x22c   : > { %v1971_v1 = vpop.permute.xlu1 %1970 }
 0x22d   : > { %v2063_v37 = vsel %vm615_vm1, %v1217_v26, %v1971_v1  ;;  %v1969_v36 = vpop.permute.xlu0 %1968  ;;  %v6815_v31 = vpop.f32.mrb[32].mxu0 }
 0x22e   : > { %2095 = vst [vmem:[%s6805_s30 + $0x28] sm:$0xff] %v2063_v37  ;;  %v2062_v12 = vsel %vm615_vm1, %v1216_v20, %v1969_v36  ;;  %v6819_v16 = vpop.f32.mrb[33].mxu0  ;;  %v1224_v20 = vadd.f32 %v6675_v53, %v6706_v55  ;;  %v1227_v55 = vadd.f32 %v6711_v39, %v6675_v53 }
 0x22f   : > { %2094 = vst [vmem:[%s6805_s30 + $0x20] sm:$0xff] %v2062_v12 }
 0x230   : > { %v1975_v51 = vpop.permute.xlu1 %1974 }
 0x231   : > { %v2065_v11 = vsel %vm615_vm1, %v1219_v45, %v1975_v51  ;;  %v1973_v38 = vpop.permute.xlu0 %1972  ;;  %v6827_v52 = vpop.f32.mrb[34].mxu0 }
 0x232   : > { %2097 = vst [vmem:[%s6805_s30 + $0x48] sm:$0xff] %v2065_v11  ;;  %v2064_v0 = vsel %vm615_vm1, %v1218_v19, %v1973_v38  ;;  %v6831_v46 = vpop.f32.mrb[35].mxu0 }
 0x233   : > { %2096 = vst [vmem:[%s6805_s30 + $0x40] sm:$0xff] %v2064_v0  ;;  %v4618_v13 = vpop.f32.mrb[32].mxu1  ;;  %v1226_v0 = vadd.f32 %v6675_v53, %v6714_v14  ;;  %v1229_v14 = vadd.f32 %v6719_v2, %v6675_v53 }
 0x234   : > { %v3135_v5 = vadd.f32 %v4618_v13, %v6675_v53  ;;  %v1979_v3 = vpop.permute.xlu1 %1978  ;;  %v2975_v58 = vpop.f32.mrb[33].mxu1 }
 0x235   : > { %v2067_v47 = vsel %vm615_vm1, %v1221_v17, %v1979_v3  ;;  %v3134_v22 = vadd.f32 %v6675_v53, %v2975_v58  ;;  %v1977_v63 = vpop.permute.xlu0 %1976  ;;  %v6841_v27 = vpop.f32.mrb[36].mxu0 }
 0x236   : > { %2099 = vst [vmem:[%s6805_s30 + $0x68] sm:$0xff] %v2067_v47  ;;  %v2066_v24 = vsel %vm615_vm1, %v1220_v32, %v1977_v63  ;;  %3200 = vrot.lane.b32.xlu1 %v3135_v5, %s5322_s14  ;;  %v6846_v50 = vpop.f32.mrb[37].mxu0 }
 0x237   : > { %2098 = vst [vmem:[%s6805_s30 + $0x60] sm:$0xff] %v2066_v24  ;;  %v4621_v34 = vpop.f32.mrb[34].mxu1  ;;  %3198 = vrot.lane.b32.xlu0 %v3134_v22, %s5322_s14  ;;  %v1228_v24 = vadd.f32 %v6675_v53, %v6722_v28  ;;  %v1231_v28 = vadd.f32 %v6727_v18, %v6675_v53 }
 0x238   : > { %v3137_v7 = vadd.f32 %v4621_v34, %v6675_v53  ;;  %v1983_v25 = vpop.permute.xlu1 %1982  ;;  %v2985_v54 = vpop.f32.mrb[35].mxu1 }
 0x239   : > { %v2069_v40 = vsel %vm615_vm1, %v1223_v41, %v1983_v25  ;;  %v3136_v9 = vadd.f32 %v6675_v53, %v2985_v54  ;;  %v1981_v59 = vpop.permute.xlu0 %1980  ;;  %v6857_v61 = vpop.f32.mrb[38].mxu0 }
 0x23a   : > { %2101 = vst [vmem:[%s6805_s30 + $0x88] sm:$0xff] %v2069_v40  ;;  %v2068_v4 = vsel %vm615_vm1, %v1222_v60, %v1981_v59  ;;  %3204 = vrot.lane.b32.xlu1 %v3137_v7, %s5322_s14  ;;  %v6862_v30 = vpop.f32.mrb[39].mxu0 }
 0x23b   : > { %2100 = vst [vmem:[%s6805_s30 + $0x80] sm:$0xff] %v2068_v4  ;;  %v4624_v26 = vpop.f32.mrb[36].mxu1  ;;  %3202 = vrot.lane.b32.xlu0 %v3136_v9, %s5322_s14  ;;  %v1230_v4 = vadd.f32 %v6675_v53, %v6730_v23  ;;  %v1233_v23 = vadd.f32 %v6735_v15, %v6675_v53 }
 0x23c   : > { %v3139_v1 = vadd.f32 %v4624_v26, %v6675_v53  ;;  %v1987_v37 = vpop.permute.xlu1 %1986  ;;  %v2995_v36 = vpop.f32.mrb[37].mxu1 }
 0x23d   : > { %v2071_v12 = vsel %vm615_vm1, %v1225_v43, %v1987_v37  ;;  %v3138_v45 = vadd.f32 %v6675_v53, %v2995_v36  ;;  %v1985_v19 = vpop.permute.xlu0 %1984  ;;  %v6873_v51 = vpop.f32.mrb[40].mxu0 }
 0x23e   : > { %2103 = vst [vmem:[%s6805_s30 + $0xa8] sm:$0xff] %v2071_v12  ;;  %v2070_v21 = vsel %vm615_vm1, %v1224_v20, %v1985_v19  ;;  %3208 = vrot.lane.b32.xlu1 %v3139_v1, %s5322_s14  ;;  %v6878_v11 = vpop.f32.mrb[41].mxu0 }
 0x23f   : > { %2102 = vst [vmem:[%s6805_s30 + $0xa0] sm:$0xff] %v2070_v21  ;;  %v4627_v38 = vpop.f32.mrb[38].mxu1  ;;  %3206 = vrot.lane.b32.xlu0 %v3138_v45, %s5322_s14  ;;  %v1232_v21 = vadd.f32 %v6675_v53, %v6738_v35  ;;  %v1235_v35 = vadd.f32 %v6743_v42, %v6675_v53 }
 0x240   : > { %v3141_v17 = vadd.f32 %v4627_v38, %v6675_v53  ;;  %v1991_v13 = vpop.permute.xlu1 %1990  ;;  %v3005_v32 = vpop.f32.mrb[39].mxu1 }
 0x241   : > { %v2073_v5 = vsel %vm615_vm1, %v1227_v55, %v1991_v13  ;;  %v3140_v3 = vadd.f32 %v6675_v53, %v3005_v32  ;;  %v1989_v58 = vpop.permute.xlu0 %1988  ;;  %v6889_v47 = vpop.f32.mrb[42].mxu0 }
 0x242   : > { %2105 = vst [vmem:[%s6805_s30 + $0xc8] sm:$0xff] %v2073_v5  ;;  %v2072_v39 = vsel %vm615_vm1, %v1226_v0, %v1989_v58  ;;  %3212 = vrot.lane.b32.xlu1 %v3141_v17, %s5322_s14  ;;  %v6894_v22 = vpop.f32.mrb[43].mxu0 }
 0x243   : > { %2104 = vst [vmem:[%s6805_s30 + $0xc0] sm:$0xff] %v2072_v39  ;;  %v4630_v63 = vpop.f32.mrb[40].mxu1  ;;  %3210 = vrot.lane.b32.xlu0 %v3140_v3, %s5322_s14  ;;  %v1234_v39 = vadd.f32 %v6675_v53, %v6746_v57  ;;  %v1237_v57 = vadd.f32 %v6751_v33, %v6675_v53 }
 0x244   : > { %v3143_v41 = vadd.f32 %v4630_v63, %v6675_v53  ;;  %v1995_v34 = vpop.permute.xlu1 %1994  ;;  %v3015_v60 = vpop.f32.mrb[41].mxu1 }
 0x245   : > { %v2075_v7 = vsel %vm615_vm1, %v1229_v14, %v1995_v34  ;;  %v3142_v25 = vadd.f32 %v6675_v53, %v3015_v60  ;;  %v1993_v54 = vpop.permute.xlu0 %1992  ;;  %v6905_v40 = vpop.f32.mrb[44].mxu0 }
 0x246   : > { %2107 = vst [vmem:[%s6805_s30 + $0xe8] sm:$0xff] %v2075_v7  ;;  %v2074_v2 = vsel %vm615_vm1, %v1228_v24, %v1993_v54  ;;  %3216 = vrot.lane.b32.xlu1 %v3143_v41, %s5322_s14  ;;  %v6910_v9 = vpop.f32.mrb[45].mxu0 }
 0x247   : > { %2106 = vst [vmem:[%s6805_s30 + $0xe0] sm:$0xff] %v2074_v2  ;;  %v4633_v59 = vpop.f32.mrb[42].mxu1  ;;  %3214 = vrot.lane.b32.xlu0 %v3142_v25, %s5322_s14  ;;  %v1236_v2 = vadd.f32 %v6675_v53, %v6754_v8  ;;  %v1239_v8 = vadd.f32 %v6759_v10, %v6675_v53 }
 0x248   : > { %v3145_v43 = vadd.f32 %v4633_v59, %v6675_v53  ;;  %v1999_v26 = vpop.permute.xlu1 %1998  ;;  %v3025_v20 = vpop.f32.mrb[43].mxu1 }
 0x249   : > { %v2077_v1 = vsel %vm615_vm1, %v1231_v28, %v1999_v26  ;;  %v3144_v37 = vadd.f32 %v6675_v53, %v3025_v20  ;;  %v1997_v36 = vpop.permute.xlu0 %1996  ;;  %v6921_v12 = vpop.f32.mrb[46].mxu0 }
 0x24a   : > { %2109 = vst [vmem:[%s6805_s30 + $0x108] sm:$0xff] %v2077_v1  ;;  %v2076_v18 = vsel %vm615_vm1, %v1230_v4, %v1997_v36  ;;  %3220 = vrot.lane.b32.xlu1 %v3145_v43, %s5322_s14  ;;  %v6926_v45 = vpop.f32.mrb[47].mxu0 }
 0x24b   : > { %2108 = vst [vmem:[%s6805_s30 + $0x100] sm:$0xff] %v2076_v18  ;;  %v4636_v19 = vpop.f32.mrb[44].mxu1  ;;  %3218 = vrot.lane.b32.xlu0 %v3144_v37, %s5322_s14  ;;  %v1238_v18 = vadd.f32 %v6675_v53, %v6762_v49  ;;  %v1241_v49 = vadd.f32 %v6767_v48, %v6675_v53 }
 0x24c   : > { %v3147_v55 = vadd.f32 %v4636_v19, %v6675_v53  ;;  %v2003_v38 = vpop.permute.xlu1 %2002  ;;  %v3035_v0 = vpop.f32.mrb[45].mxu1 }
 0x24d   : > { %v2079_v17 = vsel %vm615_vm1, %v1233_v23, %v2003_v38  ;;  %v3146_v13 = vadd.f32 %v6675_v53, %v3035_v0  ;;  %v2001_v32 = vpop.permute.xlu0 %2000  ;;  %v6937_v5 = vpop.f32.mrb[48].mxu0 }
 0x24e   : > { %2111 = vst [vmem:[%s6805_s30 + $0x128] sm:$0xff] %v2079_v17  ;;  %v2078_v15 = vsel %vm615_vm1, %v1232_v21, %v2001_v32  ;;  %3224 = vrot.lane.b32.xlu1 %v3147_v55, %s5322_s14  ;;  %v6942_v3 = vpop.f32.mrb[49].mxu0 }
 0x24f   : > { %2110 = vst [vmem:[%s6805_s30 + $0x120] sm:$0xff] %v2078_v15  ;;  %v4639_v58 = vpop.f32.mrb[46].mxu1  ;;  %3222 = vrot.lane.b32.xlu0 %v3146_v13, %s5322_s14  ;;  %v1240_v15 = vadd.f32 %v6675_v53, %v6770_v44  ;;  %v1243_v44 = vadd.f32 %v6775_v62, %v6675_v53 }
 0x250   : > { %v3149_v14 = vadd.f32 %v4639_v58, %v6675_v53  ;;  %v2007_v63 = vpop.permute.xlu1 %2006  ;;  %v3045_v24 = vpop.f32.mrb[47].mxu1 }
 0x251   : > { %v2081_v41 = vsel %vm615_vm1, %v1235_v35, %v2007_v63  ;;  %v3148_v34 = vadd.f32 %v6675_v53, %v3045_v24  ;;  %v2005_v60 = vpop.permute.xlu0 %2004  ;;  %v6953_v7 = vpop.f32.mrb[50].mxu0 }
 0x252   : > { %2113 = vst [vmem:[%s6805_s30 + $0x148] sm:$0xff] %v2081_v41  ;;  %v2080_v42 = vsel %vm615_vm1, %v1234_v39, %v2005_v60  ;;  %3228 = vrot.lane.b32.xlu1 %v3149_v14, %s5322_s14  ;;  %v6958_v25 = vpop.f32.mrb[51].mxu0 }
 0x253   : > { %2112 = vst [vmem:[%s6805_s30 + $0x140] sm:$0xff] %v2080_v42  ;;  %v4642_v54 = vpop.f32.mrb[48].mxu1  ;;  %3226 = vrot.lane.b32.xlu0 %v3148_v34, %s5322_s14  ;;  %v1242_v42 = vadd.f32 %v6675_v53, %v6778_v56  ;;  %v1245_v56 = vadd.f32 %v6783_v29, %v6675_v53 }
 0x254   : > { %v3151_v28 = vadd.f32 %v4642_v54, %v6675_v53  ;;  %v2011_v59 = vpop.permute.xlu1 %2010  ;;  %v3055_v4 = vpop.f32.mrb[49].mxu1 }
 0x255   : > { %v2083_v43 = vsel %vm615_vm1, %v1237_v57, %v2011_v59  ;;  %v3150_v26 = vadd.f32 %v6675_v53, %v3055_v4  ;;  %v2009_v20 = vpop.permute.xlu0 %2008  ;;  %v6969_v1 = vpop.f32.mrb[52].mxu0 }
 0x256   : > { %2115 = vst [vmem:[%s6805_s30 + $0x168] sm:$0xff] %v2083_v43  ;;  %v2082_v33 = vsel %vm615_vm1, %v1236_v2, %v2009_v20  ;;  %3232 = vrot.lane.b32.xlu1 %v3151_v28, %s5322_s14  ;;  %v6974_v37 = vpop.f32.mrb[53].mxu0 }
 0x257   : > { %2114 = vst [vmem:[%s6805_s30 + $0x160] sm:$0xff] %v2082_v33  ;;  %v4645_v36 = vpop.f32.mrb[50].mxu1  ;;  %3230 = vrot.lane.b32.xlu0 %v3150_v26, %s5322_s14  ;;  %v1244_v33 = vadd.f32 %v6675_v53, %v6786_v6 }
 0x258   : > { %v3153_v23 = vadd.f32 %v4645_v36, %v6675_v53  ;;  %v2015_v19 = vpop.permute.xlu1 %2014  ;;  %v3065_v21 = vpop.f32.mrb[51].mxu1 }
 0x259   : > { %v2085_v55 = vsel %vm615_vm1, %v1239_v8, %v2015_v19  ;;  %v3152_v38 = vadd.f32 %v6675_v53, %v3065_v21  ;;  %v2013_v0 = vpop.permute.xlu0 %2012  ;;  %v6985_v17 = vpop.f32.mrb[54].mxu0 }
 0x25a   : > { %2117 = vst [vmem:[%s6805_s30 + $0x188] sm:$0xff] %v2085_v55  ;;  %v2084_v10 = vsel %vm615_vm1, %v1238_v18, %v2013_v0  ;;  %3236 = vrot.lane.b32.xlu1 %v3153_v23, %s5322_s14  ;;  %v6990_v13 = vpop.f32.mrb[55].mxu0 }
 0x25b   : > { %2116 = vst [vmem:[%s6805_s30 + $0x180] sm:$0xff] %v2084_v10  ;;  %v4648_v32 = vpop.f32.mrb[52].mxu1  ;;  %3234 = vrot.lane.b32.xlu0 %v3152_v38, %s5322_s14 }
 0x25c   : > { %v3155_v35 = vadd.f32 %v4648_v32, %v6675_v53  ;;  %v2019_v58 = vpop.permute.xlu1 %2018  ;;  %v3075_v39 = vpop.f32.mrb[53].mxu1 }
 0x25d   : > { %v2087_v14 = vsel %vm615_vm1, %v1241_v49, %v2019_v58  ;;  %v3154_v63 = vadd.f32 %v6675_v53, %v3075_v39  ;;  %v2017_v24 = vpop.permute.xlu0 %2016  ;;  %v7001_v41 = vpop.f32.mrb[56].mxu0 }
 0x25e   : > { %2119 = vst [vmem:[%s6805_s30 + $0x1a8] sm:$0xff] %v2087_v14  ;;  %v2086_v48 = vsel %vm615_vm1, %v1240_v15, %v2017_v24  ;;  %3240 = vrot.lane.b32.xlu1 %v3155_v35, %s5322_s14  ;;  %v7006_v34 = vpop.f32.mrb[57].mxu0 }
 0x25f   : > { %2118 = vst [vmem:[%s6805_s30 + $0x1a0] sm:$0xff] %v2086_v48  ;;  %v4651_v60 = vpop.f32.mrb[54].mxu1  ;;  %3238 = vrot.lane.b32.xlu0 %v3154_v63, %s5322_s14 }
 0x260   : > { %v3157_v57 = vadd.f32 %v4651_v60, %v6675_v53  ;;  %v2023_v54 = vpop.permute.xlu1 %2022  ;;  %v3085_v2 = vpop.f32.mrb[55].mxu1  ;;  %v2609_v60 = vadd.f32 %v6815_v31, %v6675_v53  ;;  %v2610_v31 = vadd.f32 %v6675_v53, %v6831_v46 }
 0x261   : > { %v2089_v28 = vsel %vm615_vm1, %v1243_v44, %v2023_v54  ;;  %v3156_v59 = vadd.f32 %v6675_v53, %v3085_v2  ;;  %v2021_v4 = vpop.permute.xlu0 %2020  ;;  %v7017_v43 = vpop.f32.mrb[58].mxu0 }
 0x262   : > { %2121 = vst [vmem:[%s6805_s30 + $0x1c8] sm:$0xff] %v2089_v28  ;;  %v2088_v62 = vsel %vm615_vm1, %v1242_v42, %v2021_v4  ;;  %3244 = vrot.lane.b32.xlu1 %v3157_v57, %s5322_s14  ;;  %v7022_v26 = vpop.f32.mrb[59].mxu0  ;;  %v2608_v42 = vadd.f32 %v6675_v53, %v6819_v16 }
 0x263   : > { %2120 = vst [vmem:[%s6805_s30 + $0x1c0] sm:$0xff] %v2088_v62  ;;  %v4654_v20 = vpop.f32.mrb[56].mxu1  ;;  %3242 = vrot.lane.b32.xlu0 %v3156_v59, %s5322_s14  ;;  %v2611_v59 = vadd.f32 %v6827_v52, %v6675_v53  ;;  %v2612_v52 = vadd.f32 %v6675_v53, %v6846_v50 }
 0x264   : > { %v3159_v8 = vadd.f32 %v4654_v20, %v6675_v53  ;;  %v2027_v36 = vpop.permute.xlu1 %2026  ;;  %v3095_v18 = vpop.f32.mrb[57].mxu1  ;;  %v2613_v20 = vadd.f32 %v6841_v27, %v6675_v53  ;;  %v2614_v27 = vadd.f32 %v6675_v53, %v6862_v30 }
 0x265   : > { %v2091_v23 = vsel %vm615_vm1, %v1245_v56, %v2027_v36  ;;  %v3158_v19 = vadd.f32 %v6675_v53, %v3095_v18  ;;  %v2025_v21 = vpop.permute.xlu0 %2024  ;;  %v7033_v55 = vpop.f32.mrb[60].mxu0  ;;  %v2615_v18 = vadd.f32 %v6857_v61, %v6675_v53  ;;  %v2616_v61 = vadd.f32 %v6675_v53, %v6878_v11 }
 0x266   : > { %2123 = vst [vmem:[%s6805_s30 + $0x1e8] sm:$0xff] %v2091_v23  ;;  %v2090_v29 = vsel %vm615_vm1, %v1244_v33, %v2025_v21  ;;  %3248 = vrot.lane.b32.xlu1 %v3159_v8, %s5322_s14  ;;  %v7038_v38 = vpop.f32.mrb[61].mxu0 }
 0x267   : > { %2122 = vst [vmem:[%s6805_s30 + $0x1e0] sm:$0xff] %v2090_v29  ;;  %v4657_v6 = vpop.f32.mrb[58].mxu1  ;;  %3246 = vrot.lane.b32.xlu0 %v3158_v19, %s5322_s14  ;;  %v2617_v29 = vadd.f32 %v6873_v51, %v6675_v53  ;;  %v2618_v51 = vadd.f32 %v6675_v53, %v6894_v22 }
 0x268   : > { %v3161_v0 = vadd.f32 %v4657_v6, %v6675_v53  ;;  %v3105_v10 = vpop.f32.mrb[59].mxu1 }
 0x269   : > { %v3160_v49 = vadd.f32 %v6675_v53, %v3105_v10  ;;  %v7044_v32 = vpop.f32.mrb[62].mxu0 }
 0x26a   : > { %3252 = vrot.lane.b32.xlu1 %v3161_v0, %s5322_s14  ;;  %v7047_v15 = vpop.f32.mrb[63].mxu0 }
 0x26b   : > { %v4660_v35 = vpop.f32.mrb[60].mxu1  ;;  %3250 = vrot.lane.b32.xlu0 %v3160_v49, %s5322_s14  ;;  %v2619_v49 = vadd.f32 %v6889_v47, %v6675_v53  ;;  %v2620_v47 = vadd.f32 %v6675_v53, %v6910_v9 }
 0x26c   : > { %v3163_v58 = vadd.f32 %v4660_v35, %v6675_v53  ;;  %v3115_v39 = vpop.f32.mrb[61].mxu1 }
 0x26d   : > { %v3162_v14 = vadd.f32 %v6675_v53, %v3115_v39 }
 0x26e   : > { %3256 = vrot.lane.b32.xlu1 %v3163_v58, %s5322_s14 }
 0x26f   : > { %v4663_v63 = vpop.f32.mrb[62].mxu1  ;;  %3254 = vrot.lane.b32.xlu0 %v3162_v14, %s5322_s14  ;;  %v2621_v14 = vadd.f32 %v6905_v40, %v6675_v53  ;;  %v2622_v40 = vadd.f32 %v6675_v53, %v6926_v45 }
 0x270   : > { %v3165_v24 = vadd.f32 %v4663_v63, %v6675_v53  ;;  %v3125_v48 = vpop.f32.mrb[63].mxu1 }
 0x271   : > { %v3164_v44 = vadd.f32 %v6675_v53, %v3125_v48 }
 0x272   : > { %3260 = vrot.lane.b32.xlu1 %v3165_v24, %s5322_s14 }
 0x273   : > { %3258 = vrot.lane.b32.xlu0 %v3164_v44, %s5322_s14  ;;  %v2623_v44 = vadd.f32 %v6921_v12, %v6675_v53  ;;  %v2624_v12 = vadd.f32 %v6675_v53, %v6942_v3  ;;  %s3639_s14 = sshll.u32 %s5312_s18, 13  ;;  %s7197_s18 = scalar_lea.sflag [#allocation3], %s268_s21 }
 0x274   : > { %s7187_s11 = scalar_lea.hbm %s7247_s4, %s3639_s14 }
 0x2a8   : > { %v3201_v57 = vpop.permute.xlu1 %3200 }
 0x2a9   : > { %v3295_v54 = vsel %vm615_vm1, %v2609_v60, %v3201_v57  ;;  %v3199_v2 = vpop.permute.xlu0 %3198 }
 0x2aa   : > { %3601 = vst [vmem:[%s6805_s30 + $0x18] sm:$0xff] %v3295_v54  ;;  %v3294_v28 = vsel %vm615_vm1, %v2608_v42, %v3199_v2  ;;  %v2625_v54 = vadd.f32 %v6937_v5, %v6675_v53  ;;  %v2626_v5 = vadd.f32 %v6675_v53, %v6958_v25 }
 0x2ab   : > { %3600 = vst [vmem:[%s6805_s30 + $0x10] sm:$0xff] %v3294_v28 }
 0x2ac   : > { %v3205_v4 = vpop.permute.xlu1 %3204 }
 0x2ad   : > { %v3297_v62 = vsel %vm615_vm1, %v2611_v59, %v3205_v4  ;;  %v3203_v16 = vpop.permute.xlu0 %3202 }
 0x2ae   : > { %3603 = vst [vmem:[%s6805_s30 + $0x38] sm:$0xff] %v3297_v62  ;;  %v3296_v56 = vsel %vm615_vm1, %v2610_v31, %v3203_v16  ;;  %v2627_v31 = vadd.f32 %v6953_v7, %v6675_v53  ;;  %v2628_v7 = vadd.f32 %v6675_v53, %v6974_v37 }
 0x2af   : > { %3602 = vst [vmem:[%s6805_s30 + $0x30] sm:$0xff] %v3296_v56  ;;  %v2629_v56 = vadd.f32 %v6969_v1, %v6675_v53  ;;  %v2630_v1 = vadd.f32 %v6675_v53, %v6990_v13 }
 0x2b0   : > { %v3209_v33 = vpop.permute.xlu1 %3208 }
 0x2b1   : > { %v3299_v8 = vsel %vm615_vm1, %v2613_v20, %v3209_v33  ;;  %v3207_v46 = vpop.permute.xlu0 %3206 }
 0x2b2   : > { %3605 = vst [vmem:[%s6805_s30 + $0x58] sm:$0xff] %v3299_v8  ;;  %v3298_v36 = vsel %vm615_vm1, %v2612_v52, %v3207_v46  ;;  %v2631_v8 = vadd.f32 %v6985_v17, %v6675_v53  ;;  %v2632_v17 = vadd.f32 %v6675_v53, %v7006_v34 }
 0x2b3   : > { %3604 = vst [vmem:[%s6805_s30 + $0x50] sm:$0xff] %v3298_v36 }
 0x2b4   : > { %v3213_v23 = vpop.permute.xlu1 %3212 }
 0x2b5   : > { %v3301_v19 = vsel %vm615_vm1, %v2615_v18, %v3213_v23  ;;  %v3211_v50 = vpop.permute.xlu0 %3210 }
 0x2b6   : > { %3607 = vst [vmem:[%s6805_s30 + $0x78] sm:$0xff] %v3301_v19  ;;  %v3300_v21 = vsel %vm615_vm1, %v2614_v27, %v3211_v50  ;;  %v2633_v27 = vadd.f32 %v7001_v41, %v6675_v53  ;;  %v2634_v41 = vadd.f32 %v6675_v53, %v7022_v26 }
 0x2b7   : > { %3606 = vst [vmem:[%s6805_s30 + $0x70] sm:$0xff] %v3300_v21  ;;  %v2635_v21 = vadd.f32 %v7017_v43, %v6675_v53  ;;  %v2636_v43 = vadd.f32 %v6675_v53, %v7038_v38  ;;  %v2638_v38 = vadd.f32 %v6675_v53, %v7047_v15 }
 0x2b8   : > { %v3217_v6 = vpop.permute.xlu1 %3216 }
 0x2b9   : > { %v3303_v0 = vsel %vm615_vm1, %v2617_v29, %v3217_v6  ;;  %v3215_v30 = vpop.permute.xlu0 %3214 }
 0x2ba   : > { %3609 = vst [vmem:[%s6805_s30 + $0x98] sm:$0xff] %v3303_v0  ;;  %v3302_v10 = vsel %vm615_vm1, %v2616_v61, %v3215_v30  ;;  %v2637_v0 = vadd.f32 %v7033_v55, %v6675_v53  ;;  %v2639_v55 = vadd.f32 %v7044_v32, %v6675_v53 }
 0x2bb   : > { %3608 = vst [vmem:[%s6805_s30 + $0x90] sm:$0xff] %v3302_v10 }
 0x2bc   : > { %v3221_v35 = vpop.permute.xlu1 %3220 }
 0x2bd   : > { %v3305_v58 = vsel %vm615_vm1, %v2619_v49, %v3221_v35  ;;  %v3219_v11 = vpop.permute.xlu0 %3218 }
 0x2be   : > { %3611 = vst [vmem:[%s6805_s30 + $0xb8] sm:$0xff] %v3305_v58  ;;  %v3304_v39 = vsel %vm615_vm1, %v2618_v51, %v3219_v11 }
 0x2bf   : > { %3610 = vst [vmem:[%s6805_s30 + $0xb0] sm:$0xff] %v3304_v39 }
 0x2c0   : > { %v3225_v63 = vpop.permute.xlu1 %3224 }
 0x2c1   : > { %v3307_v24 = vsel %vm615_vm1, %v2621_v14, %v3225_v63  ;;  %v3223_v22 = vpop.permute.xlu0 %3222 }
 0x2c2   : > { %3613 = vst [vmem:[%s6805_s30 + $0xd8] sm:$0xff] %v3307_v24  ;;  %v3306_v48 = vsel %vm615_vm1, %v2620_v47, %v3223_v22 }
 0x2c3   : > { %3612 = vst [vmem:[%s6805_s30 + $0xd0] sm:$0xff] %v3306_v48 }
 0x2c4   : > { %v3229_v60 = vpop.permute.xlu1 %3228 }
 0x2c5   : > { %v3309_v42 = vsel %vm615_vm1, %v2623_v44, %v3229_v60  ;;  %v3227_v9 = vpop.permute.xlu0 %3226 }
 0x2c6   : > { %3615 = vst [vmem:[%s6805_s30 + $0xf8] sm:$0xff] %v3309_v42  ;;  %v3308_v57 = vsel %vm615_vm1, %v2622_v40, %v3227_v9 }
 0x2c7   : > { %3614 = vst [vmem:[%s6805_s30 + $0xf0] sm:$0xff] %v3308_v57 }
 0x2c8   : > { %v3233_v2 = vpop.permute.xlu1 %3232 }
 0x2c9   : > { %v3311_v28 = vsel %vm615_vm1, %v2625_v54, %v3233_v2  ;;  %v3231_v45 = vpop.permute.xlu0 %3230 }
 0x2ca   : > { %3617 = vst [vmem:[%s6805_s30 + $0x118] sm:$0xff] %v3311_v28  ;;  %v3310_v59 = vsel %vm615_vm1, %v2624_v12, %v3231_v45 }
 0x2cb   : > { %3616 = vst [vmem:[%s6805_s30 + $0x110] sm:$0xff] %v3310_v59 }
 0x2cc   : > { %v3237_v4 = vpop.permute.xlu1 %3236 }
 0x2cd   : > { %v3313_v62 = vsel %vm615_vm1, %v2627_v31, %v3237_v4  ;;  %v3235_v3 = vpop.permute.xlu0 %3234 }
 0x2ce   : > { %3619 = vst [vmem:[%s6805_s30 + $0x138] sm:$0xff] %v3313_v62  ;;  %v3312_v16 = vsel %vm615_vm1, %v2626_v5, %v3235_v3 }
 0x2cf   : > { %3618 = vst [vmem:[%s6805_s30 + $0x130] sm:$0xff] %v3312_v16 }
 0x2d0   : > { %v3241_v20 = vpop.permute.xlu1 %3240 }
 0x2d1   : > { %v3315_v52 = vsel %vm615_vm1, %v2629_v56, %v3241_v20  ;;  %v3239_v25 = vpop.permute.xlu0 %3238 }
 0x2d2   : > { %3621 = vst [vmem:[%s6805_s30 + $0x158] sm:$0xff] %v3315_v52  ;;  %v3314_v33 = vsel %vm615_vm1, %v2628_v7, %v3239_v25 }
 0x2d3   : > { %3620 = vst [vmem:[%s6805_s30 + $0x150] sm:$0xff] %v3314_v33 }
 0x2d4   : > { %v3245_v46 = vpop.permute.xlu1 %3244 }
 0x2d5   : > { %v3317_v36 = vsel %vm615_vm1, %v2631_v8, %v3245_v46  ;;  %v3243_v37 = vpop.permute.xlu0 %3242 }
 0x2d6   : > { %3623 = vst [vmem:[%s6805_s30 + $0x178] sm:$0xff] %v3317_v36  ;;  %v3316_v18 = vsel %vm615_vm1, %v2630_v1, %v3243_v37 }
 0x2d7   : > { %3622 = vst [vmem:[%s6805_s30 + $0x170] sm:$0xff] %v3316_v18 }
 0x2d8   : > { %v3249_v23 = vpop.permute.xlu1 %3248 }
 0x2d9   : > { %v3319_v19 = vsel %vm615_vm1, %v2633_v27, %v3249_v23  ;;  %v3247_v13 = vpop.permute.xlu0 %3246 }
 0x2da   : > { %3625 = vst [vmem:[%s6805_s30 + $0x198] sm:$0xff] %v3319_v19  ;;  %v3318_v50 = vsel %vm615_vm1, %v2632_v17, %v3247_v13 }
 0x2db   : > { %3624 = vst [vmem:[%s6805_s30 + $0x190] sm:$0xff] %v3318_v50 }
 0x2dc   : > { %v3253_v29 = vpop.permute.xlu1 %3252 }
 0x2dd   : > { %v3321_v34 = vsel %vm615_vm1, %v2635_v21, %v3253_v29  ;;  %v3251_v61 = vpop.permute.xlu0 %3250 }
 0x2de   : > { %3627 = vst [vmem:[%s6805_s30 + $0x1b8] sm:$0xff] %v3321_v34  ;;  %v3320_v6 = vsel %vm615_vm1, %v2634_v41, %v3251_v61 }
 0x2df   : > { %3626 = vst [vmem:[%s6805_s30 + $0x1b0] sm:$0xff] %v3320_v6 }
 0x2e0   : > { %v3257_v30 = vpop.permute.xlu1 %3256 }
 0x2e1   : > { %v3323_v10 = vsel %vm615_vm1, %v2637_v0, %v3257_v30  ;;  %v3255_v26 = vpop.permute.xlu0 %3254 }
 0x2e2   : > { %3629 = vst [vmem:[%s6805_s30 + $0x1d8] sm:$0xff] %v3323_v10  ;;  %v3322_v49 = vsel %vm615_vm1, %v2636_v43, %v3255_v26 }
 0x2e3   : > { %3628 = vst [vmem:[%s6805_s30 + $0x1d0] sm:$0xff] %v3322_v49 }
 0x2e4   : > { %v3261_v51 = vpop.permute.xlu1 %3260 }
 0x2e5   : > { %v3325_v35 = vsel %vm615_vm1, %v2639_v55, %v3261_v51  ;;  %v3259_v58 = vpop.permute.xlu0 %3258 }
 0x2e6   : > { %3631 = vst [vmem:[%s6805_s30 + $0x1f8] sm:$0xff] %v3325_v35  ;;  %v3324_v32 = vsel %vm615_vm1, %v2638_v38, %v3259_v58 }
 0x2e7   : > { %3630 = vst [vmem:[%s6805_s30 + $0x1f0] sm:$0xff] %v3324_v32 }
 0x2e8   : > { %5255 = shalt.err (!%p5252_p5)
}
 0x2e9   : > { %s5256_s6 = scalar_lea.hbm %s7187_s11, 8192  ;;  %s5260_s29 = scalar_lea.hbm %s7247_s4, 16384 }
 0x2ea   : > { %p5257_p6 = scmp.ne.s32.totalorder %s7187_s11, %s5256_s6  ;;  %p5261_p10 = scmp.lt.u32.totalorder %s7187_s11, %s7247_s4 }
 0x2eb   : > { %p5262_p11 = scmp.lt.u32.totalorder %s5260_s29, %s5256_s6  ;;  %p5264_p13 = scmp.lt.u32.totalorder %s5256_s6, %s7187_s11 }
 0x2ec   : > { %p5258_p7 = pnand %p5257_p6, %p5391_p4 }
 0x2ed   : > { %p5263_p12 = por %p5262_p11, %p5261_p10 }
 0x2ee   : > { %p5259_p9 = pneg %p5258_p7 }
 0x2ef   : > { %p5265_p0 = por %p5264_p13, %p5263_p12 }
 0x2f1   : > { %p5266_p1 = pnand %p5265_p0, %p5259_p9 }
 0x2f3   : > { %5269 = shalt.err (!%p5266_p1)
}
 0x2f4   : > { %s5324_s30 = smov 128   ;;  %s5325_s14 = smov 8  }
 0x2f5   : > { %5050 = dma.vmem_to_hbm [thread:$0]  (%p5391_p4), %s7189_s7, 8192, %s7187_s11, %s7197_s18, %s5324_s30, %s5324_s30, %s5325_s14  }
 0x2f6 PF: > { %p5057_p2 = scmp.ge.s32.totalorder %s5320_s20, 2  ;;  %s3391_s9 = sand.u32 1, %s5300_s15  }
 0x2f7   : > { %s3392_s10 = scalar_lea.sflag [#allocation3], %s3391_s9 }
 0x2f8   : > { %p5053_p3 = pnand %p5057_p2, %p5398_p8 }
 0x2fa   : > { %5295 = dma.done.wait (!%p5053_p3), %s3392_s10, 8192  }
 0x2fb   : > { %5297 = vsyncadd (!%p5053_p3), %s3392_s10, 4294959104  ;;  %s17_s20 = sadd.s32 1, %s5320_s20   ;;  %s7394_s15 = smov %s5304_s16 }
 0x2fc   : > { %p14_p5 = scmp.ge.s32.totalorder %s17_s20, 4   ;;  %s7395_s16 = smov %s5308_s17 }
 0x2fd   : > { %s7396_s17 = smov %s5404_s28  ;;  %s7397_s18 = smov %s5316_s19 }
 0x2fe   : > { %s7398_s19 = smov %s7400_s23  ;;  %16 = sbr.rel (!%p14_p5) target bundleno = 4 (0x4), region = 82 }
 0x305   :  { %3397 = vsyncpa [#allocation3], 1 }
 0x306   :  { %3399 = vsyncpa [#allocation3 + $0x1], 1 }

</bundles_post_ra>
